<compile_context>
chip_gen: v7x
topology: tpu7x:2x2x1
jax: 0.10.0
libtpu: 0.0.40
codegen_flags: <defaults>
</compile_context>

<pallas_src>
import jax
import jax.numpy as jnp
from jax.experimental import pallas as pl
from jax.experimental.pallas import tpu as pltpu


def _round_up(x, m):
    return ((x + m - 1) // m) * m


def gru_kernel(len_ref, gi_ref, whh_ref, bhn_ref, out_ref, hid_ref, h_scratch):
    """One grid step == one chunk of TC time steps of the GRU recurrence.

    len_ref : (B_pad, 1) int32   sequence lengths (replaces pack_padded_sequence)
    gi_ref  : (TC, B_pad, 3*Hp)  precomputed x@W_ih^T + b_ih (+ b_hh for r,z), gate slabs [r|z|n]
    whh_ref : (Hp, 3*Hp) bf16    W_hh^T with gate slabs at Hp-aligned offsets
    bhn_ref : (1, Hp) f32        b_hn (kept separate because it is scaled by r)
    out_ref : (TC, B_pad, Hp)    per-step outputs (zero where t >= length)
    hid_ref : (B_pad, Hp)        final hidden per sequence (frozen after its length)
    h_scratch: (B_pad, Hp) f32   recurrent state carried across grid steps
    """
    c = pl.program_id(0)
    TC = gi_ref.shape[0]
    Hp = hid_ref.shape[-1]

    @pl.when(c == 0)
    def _():
        h_scratch[...] = jnp.zeros_like(h_scratch)

    lengths = len_ref[...]          # (B_pad, 1) int32
    b_hn = bhn_ref[...]             # (1, Hp) f32
    t0 = c * TC

    def step(s, h_prev):
        gi = gi_ref[s]              # (B_pad, 3*Hp) f32, biases already folded in
        # Serial critical path: only the recurrent matmul (bf16 operands, f32 accumulate).
        gh = jnp.dot(h_prev.astype(jnp.bfloat16), whh_ref[...],
                     preferred_element_type=jnp.float32)          # (B_pad, 3*Hp)
        # 128-aligned gate slabs -> no cross-lane shuffles.
        r = jax.nn.sigmoid(gi[:, 0:Hp] + gh[:, 0:Hp])
        z = jax.nn.sigmoid(gi[:, Hp:2 * Hp] + gh[:, Hp:2 * Hp])
        n = jnp.tanh(gi[:, 2 * Hp:3 * Hp] + r * (gh[:, 2 * Hp:3 * Hp] + b_hn))
        h_new = (1.0 - z) * n + z * h_prev
        # pack_padded_sequence semantics: state freezes at length, padded outputs are zero.
        valid = lengths > (t0 + s)  # (B_pad, 1) bool
        out_ref[s] = jnp.where(valid, h_new, 0.0)
        return jnp.where(valid, h_new, h_prev)

    h_final = jax.lax.fori_loop(0, TC, step, h_scratch[...], unroll=True)
    h_scratch[...] = h_final
    hid_ref[...] = h_final          # resident block; holds per-sequence final hidden


def init_encoder_params(key, input_size, embed_size, hidden_size):
    k_emb, k_wih, k_whh, k_bih, k_bhh = jax.random.split(key, 5)
    k = 1.0 / jnp.sqrt(hidden_size)
    return {
        # nn.Embedding default init: N(0, 1)
        "embedding": jax.random.normal(k_emb, (input_size, embed_size), jnp.float32),
        # nn.GRU default init: U(-1/sqrt(H), 1/sqrt(H)), gate order [r, z, n]
        "w_ih": jax.random.uniform(k_wih, (3 * hidden_size, embed_size), jnp.float32, -k, k),
        "w_hh": jax.random.uniform(k_whh, (3 * hidden_size, hidden_size), jnp.float32, -k, k),
        "b_ih": jax.random.uniform(k_bih, (3 * hidden_size,), jnp.float32, -k, k),
        "b_hh": jax.random.uniform(k_bhh, (3 * hidden_size,), jnp.float32, -k, k),
    }


def _pack_gru_weights(params, H, Hp):
    """Lay gates out as 128-aligned slabs [r | z | n] and pre-fold biases."""
    w_ih, w_hh = params["w_ih"], params["w_hh"]
    b_ih, b_hh = params["b_ih"], params["b_hh"]
    E = w_ih.shape[1]
    wih_T = jnp.zeros((E, 3 * Hp), jnp.float32)
    whh_T = jnp.zeros((Hp, 3 * Hp), jnp.float32)
    for g in range(3):
        wih_T = wih_T.at[:, g * Hp:g * Hp + H].set(w_ih[g * H:(g + 1) * H, :].T)
        whh_T = whh_T.at[:H, g * Hp:g * Hp + H].set(w_hh[g * H:(g + 1) * H, :].T)
    # b_ih (all gates) + b_hh (r, z gates only) folded into the hoisted projection bias.
    b_gi = jnp.zeros((3 * Hp,), jnp.float32)
    b_gi = b_gi.at[0:H].set(b_ih[0:H] + b_hh[0:H])
    b_gi = b_gi.at[Hp:Hp + H].set(b_ih[H:2 * H] + b_hh[H:2 * H])
    b_gi = b_gi.at[2 * Hp:2 * Hp + H].set(b_ih[2 * H:3 * H])
    # b_hn stays separate (scaled by r inside the kernel).
    b_hn = jnp.zeros((1, Hp), jnp.float32).at[0, :H].set(b_hh[2 * H:3 * H])
    return wih_T, whh_T, b_gi, b_hn


def encoder_forward(params, tokens, lengths, *, time_chunk=8):
    """tokens: (B, T) int32, lengths: python list of ints (host values)."""
    B, T = tokens.shape
    E = params["embedding"].shape[1]
    H = params["w_hh"].shape[1]

    lengths_list = [int(l) for l in lengths]
    t_max = max(lengths_list)

    # Padded, lane-dense sizes.
    B_pad = _round_up(B, 8)                 # f32 sublane tile
    Hp = _round_up(H, 128)                  # lane tile
    TC = max(1, min(time_chunk, t_max))     # time-chunk size inside the kernel
    num_chunks = -(-t_max // TC)            # grid bounded by max(lengths), not T
    T_pad = num_chunks * TC

    wih_T, whh_T, b_gi, b_hn = _pack_gru_weights(params, H, Hp)

    # Embedding lookup, gathered time-major directly (no activation transpose round-trip).
    emb_tbe = jnp.take(params["embedding"], tokens.T, axis=0)[:t_max]   # (t_max, B, E)
    # TODO(synk): nn.Dropout(0.1) is treated as identity (eval-mode semantics).
    emb_pad = jnp.zeros((T_pad, B_pad, E), jnp.float32).at[:t_max, :B].set(emb_tbe)

    # Hoisted input projection: one large bf16 matmul with f32 accumulation, biases folded in.
    gi = jnp.dot(emb_pad.reshape(T_pad * B_pad, E).astype(jnp.bfloat16),
                 wih_T.astype(jnp.bfloat16),
                 preferred_element_type=jnp.float32) + b_gi
    gi = gi.reshape(T_pad, B_pad, 3 * Hp)

    lengths_arr = jnp.zeros((B_pad, 1), jnp.int32).at[:B, 0].set(
        jnp.asarray(lengths_list, jnp.int32))

    outputs_tbh, hidden_bh = pl.pallas_call(
        gru_kernel,
        out_shape=(
            jax.ShapeDtypeStruct((T_pad, B_pad, Hp), jnp.float32),
            jax.ShapeDtypeStruct((B_pad, Hp), jnp.float32),
        ),
        grid_spec=pltpu.PrefetchScalarGridSpec(
            num_scalar_prefetch=0,
            grid=(num_chunks,),
            in_specs=[
                pl.BlockSpec((B_pad, 1), lambda c: (0, 0)),              # lengths
                pl.BlockSpec((TC, B_pad, 3 * Hp), lambda c: (c, 0, 0)),  # precomputed gi chunk
                pl.BlockSpec((Hp, 3 * Hp), lambda c: (0, 0)),            # W_hh^T (bf16)
                pl.BlockSpec((1, Hp), lambda c: (0, 0)),                 # b_hn
            ],
            out_specs=[
                pl.BlockSpec((TC, B_pad, Hp), lambda c: (c, 0, 0)),      # outputs chunk
                pl.BlockSpec((B_pad, Hp), lambda c: (0, 0)),             # final hidden (resident)
            ],
            scratch_shapes=[pltpu.VMEM((B_pad, Hp), jnp.float32)],
        ),
        compiler_params=pltpu.CompilerParams(
            dimension_semantics=("arbitrary",),   # time recurrence is sequential
            vmem_limit_bytes=32 * 1024 * 1024,
        ),
    )(lengths_arr, gi, whh_T.astype(jnp.bfloat16), b_hn)

    # pad_packed_sequence(batch_first=True) returns (B, max(lengths), H); single final transpose.
    outputs = jnp.transpose(outputs_tbh[:t_max, :B, :H], (1, 0, 2))
    hidden = hidden_bh[:B, :H][None, :, :]                               # (1, B, H)
    return outputs, hidden


if __name__ == "__main__":
    INPUT_SIZE = 50    # vocab
    EMBED_SIZE = 32
    HIDDEN_SIZE = 32
    B, T = 2, 8
    LENGTHS = [8, 5]   # unsorted-tolerant, like enforce_sorted=False

    key = jax.random.PRNGKey(0)
    k_params, k_tok = jax.random.split(key)
    params = init_encoder_params(k_params, INPUT_SIZE, EMBED_SIZE, HIDDEN_SIZE)
    tokens = jax.random.randint(k_tok, (B, T), 0, INPUT_SIZE, dtype=jnp.int32)

    outputs, hidden = encoder_forward(params, tokens, LENGTHS)
    jax.block_until_ready((outputs, hidden))

    assert outputs.shape == (B, max(LENGTHS), HIDDEN_SIZE)
    assert hidden.shape == (1, B, HIDDEN_SIZE)
    # padded positions (t >= length) must be exactly zero
    assert bool(jnp.all(outputs[1, LENGTHS[1]:, :] == 0.0))
    # hidden = last valid output of each sequence
    assert bool(jnp.allclose(hidden[0, 0], outputs[0, LENGTHS[0] - 1]))
    assert bool(jnp.allclose(hidden[0, 1], outputs[1, LENGTHS[1] - 1]))

    print("KERNEL_OK")
</pallas_src>

<mosaic_0001>
module attributes {stable_mosaic.version = 11 : i64} {
  func.func @gru_kernel(%arg0: i32, %arg1: memref<8x1xi32, #tpu.memory_space<vmem>>, %arg2: memref<8x8x384xf32, #tpu.memory_space<vmem>>, %arg3: memref<128x384xbf16, #tpu.memory_space<vmem>>, %arg4: memref<1x128xf32, #tpu.memory_space<vmem>>, %arg5: memref<8x8x128xf32, #tpu.memory_space<vmem>>, %arg6: memref<8x128xf32, #tpu.memory_space<vmem>>, %arg7: memref<8x128xf32, #tpu.memory_space<vmem>>) attributes {dimension_semantics = [#tpu.dimension_semantics<arbitrary>], iteration_bounds = array<i64: 1>, scalar_prefetch = 0 : i64, scratch_operands = 1 : i64, tpu.core_type = #tpu.core_type<tc>, window_params = [{pipeline_mode = #tpu.pipeline_mode<synchronous>, transform_indices = @transform_0, window_bounds = array<i64: 8, 1>}, {transform_indices = @transform_1, window_bounds = array<i64: 8, 8, 384>}, {pipeline_mode = #tpu.pipeline_mode<synchronous>, transform_indices = @transform_2, window_bounds = array<i64: 128, 384>}, {pipeline_mode = #tpu.pipeline_mode<synchronous>, transform_indices = @transform_3, window_bounds = array<i64: 1, 128>}, {transform_indices = @transform_4, window_bounds = array<i64: 8, 8, 128>}, {pipeline_mode = #tpu.pipeline_mode<synchronous>, transform_indices = @transform_5, window_bounds = array<i64: 8, 128>}]} {
    %c0_i32 = arith.constant 0 : i32
    %0 = arith.cmpi eq, %arg0, %c0_i32 : i32
    %1 = arith.extui %0 : i1 to i32
    %c0_i32_0 = arith.constant 0 : i32
    %2 = arith.cmpi ne, %1, %c0_i32_0 : i32
    scf.if %2 {
      %cst_99 = arith.constant 0.000000e+00 : f32
      %393 = vector.broadcast %cst_99 : f32 to vector<8x128xf32>
      %c0_100 = arith.constant 0 : index
      %c0_101 = arith.constant 0 : index
      %394 = vector.load %arg7[%c0_100, %c0_101] : memref<8x128xf32, #tpu.memory_space<vmem>>, vector<8x128xf32>
      tpu.vector_store %arg7[%c0_100, %c0_101], %393 {strides = array<i32>} : memref<8x128xf32, #tpu.memory_space<vmem>>, vector<8x128xf32>,
    } else {
    }
    %c0 = arith.constant 0 : index
    %c0_1 = arith.constant 0 : index
    %3 = vector.load %arg1[%c0, %c0_1] : memref<8x1xi32, #tpu.memory_space<vmem>>, vector<8x1xi32>
    %c0_2 = arith.constant 0 : index
    %c0_3 = arith.constant 0 : index
    %4 = vector.load %arg4[%c0_2, %c0_3] : memref<1x128xf32, #tpu.memory_space<vmem>>, vector<1x128xf32>
    %c8_i32 = arith.constant 8 : i32
    %5 = arith.muli %arg0, %c8_i32 : i32
    %c0_4 = arith.constant 0 : index
    %c0_5 = arith.constant 0 : index
    %6 = vector.load %arg7[%c0_4, %c0_5] : memref<8x128xf32, #tpu.memory_space<vmem>>, vector<8x128xf32>
    %c0_i32_6 = arith.constant 0 : i32
    %7 = arith.index_cast %c0_i32_6 : i32 to index
    %c0_7 = arith.constant 0 : index
    %c0_8 = arith.constant 0 : index
    %8 = vector.load %arg2[%7, %c0_7, %c0_8] : memref<8x8x384xf32, #tpu.memory_space<vmem>>, vector<1x8x384xf32>
    %9 = vector.shape_cast %8 : vector<1x8x384xf32> to vector<8x384xf32>
    %10 = arith.truncf %6 : vector<8x128xf32> to vector<8x128xbf16>
    %c0_9 = arith.constant 0 : index
    %c0_10 = arith.constant 0 : index
    %11 = vector.load %arg3[%c0_9, %c0_10] : memref<128x384xbf16, #tpu.memory_space<vmem>>, vector<128x384xbf16>
    %cst = arith.constant dense<0.000000e+00> : vector<8x384xf32>
    %12 = tpu.matmul %10, %11, %cst {dimension_numbers = #tpu.dot_dimension_numbers<[1], [0], [0], [1], [0, 0, 1, 1], [], []>} : vector<8x128xbf16>, vector<128x384xbf16>, vector<8x384xf32> -> vector<8x384xf32>
    %13 = vector.extract_strided_slice %9 {offsets = [0, 0], sizes = [8, 128], strides = [1, 1]} : vector<8x384xf32> to vector<8x128xf32>
    %14 = vector.extract_strided_slice %12 {offsets = [0, 0], sizes = [8, 128], strides = [1, 1]} : vector<8x384xf32> to vector<8x128xf32>
    %15 = arith.addf %13, %14 : vector<8x128xf32>
    %16 = arith.negf %15 : vector<8x128xf32>
    %17 = math.exp %16 : vector<8x128xf32>
    %cst_11 = arith.constant 1.000000e+00 : f32
    %18 = vector.broadcast %cst_11 : f32 to vector<8x128xf32>
    %19 = arith.addf %18, %17 : vector<8x128xf32>
    %20 = arith.divf %18, %19 : vector<8x128xf32>
    %21 = vector.extract_strided_slice %9 {offsets = [0, 128], sizes = [8, 128], strides = [1, 1]} : vector<8x384xf32> to vector<8x128xf32>
    %22 = vector.extract_strided_slice %12 {offsets = [0, 128], sizes = [8, 128], strides = [1, 1]} : vector<8x384xf32> to vector<8x128xf32>
    %23 = arith.addf %21, %22 : vector<8x128xf32>
    %24 = arith.negf %23 : vector<8x128xf32>
    %25 = math.exp %24 : vector<8x128xf32>
    %cst_12 = arith.constant 1.000000e+00 : f32
    %26 = vector.broadcast %cst_12 : f32 to vector<8x128xf32>
    %27 = arith.addf %26, %25 : vector<8x128xf32>
    %28 = arith.divf %26, %27 : vector<8x128xf32>
    %29 = vector.extract_strided_slice %9 {offsets = [0, 256], sizes = [8, 128], strides = [1, 1]} : vector<8x384xf32> to vector<8x128xf32>
    %30 = vector.extract_strided_slice %12 {offsets = [0, 256], sizes = [8, 128], strides = [1, 1]} : vector<8x384xf32> to vector<8x128xf32>
    %31 = vector.broadcast %4 : vector<1x128xf32> to vector<8x128xf32>
    %32 = arith.addf %30, %31 : vector<8x128xf32>
    %33 = arith.mulf %20, %32 : vector<8x128xf32>
    %34 = arith.addf %29, %33 : vector<8x128xf32>
    %35 = math.tanh %34 : vector<8x128xf32>
    %cst_13 = arith.constant 1.000000e+00 : f32
    %36 = vector.broadcast %cst_13 : f32 to vector<8x128xf32>
    %37 = arith.subf %36, %28 : vector<8x128xf32>
    %38 = arith.mulf %37, %35 : vector<8x128xf32>
    %39 = arith.mulf %28, %6 : vector<8x128xf32>
    %40 = arith.addf %38, %39 : vector<8x128xf32>
    %41 = arith.addi %5, %c0_i32_6 : i32
    %42 = vector.broadcast %41 : i32 to vector<8x1xi32>
    %43 = arith.cmpi sgt, %3, %42 : vector<8x1xi32>
    %cst_14 = arith.constant 0.000000e+00 : f32
    %44 = vector.shape_cast %43 : vector<8x1xi1> to vector<8x1xi1>
    %45 = vector.broadcast %44 : vector<8x1xi1> to vector<8x128xi1>
    %46 = vector.broadcast %cst_14 : f32 to vector<8x128xf32>
    %47 = arith.select %45, %40, %46 : vector<8x128xi1>, vector<8x128xf32>
    %48 = arith.index_cast %c0_i32_6 : i32 to index
    %c0_15 = arith.constant 0 : index
    %c0_16 = arith.constant 0 : index
    %49 = vector.load %arg5[%48, %c0_15, %c0_16] : memref<8x8x128xf32, #tpu.memory_space<vmem>>, vector<1x8x128xf32>
    %50 = vector.shape_cast %49 : vector<1x8x128xf32> to vector<8x128xf32>
    %51 = vector.shape_cast %47 : vector<8x128xf32> to vector<1x8x128xf32>
    tpu.vector_store %arg5[%48, %c0_15, %c0_16], %51 {strides = array<i32>} : memref<8x8x128xf32, #tpu.memory_space<vmem>>, vector<1x8x128xf32>,
    %52 = vector.shape_cast %43 : vector<8x1xi1> to vector<8x1xi1>
    %53 = vector.broadcast %52 : vector<8x1xi1> to vector<8x128xi1>
    %54 = arith.select %53, %40, %6 : vector<8x128xi1>, vector<8x128xf32>
    %c1_i32 = arith.constant 1 : i32
    %55 = arith.index_cast %c1_i32 : i32 to index
    %c0_17 = arith.constant 0 : index
    %c0_18 = arith.constant 0 : index
    %56 = vector.load %arg2[%55, %c0_17, %c0_18] : memref<8x8x384xf32, #tpu.memory_space<vmem>>, vector<1x8x384xf32>
    %57 = vector.shape_cast %56 : vector<1x8x384xf32> to vector<8x384xf32>
    %58 = arith.truncf %54 : vector<8x128xf32> to vector<8x128xbf16>
    %c0_19 = arith.constant 0 : index
    %c0_20 = arith.constant 0 : index
    %59 = vector.load %arg3[%c0_19, %c0_20] : memref<128x384xbf16, #tpu.memory_space<vmem>>, vector<128x384xbf16>
    %cst_21 = arith.constant dense<0.000000e+00> : vector<8x384xf32>
    %60 = tpu.matmul %58, %59, %cst_21 {dimension_numbers = #tpu.dot_dimension_numbers<[1], [0], [0], [1], [0, 0, 1, 1], [], []>} : vector<8x128xbf16>, vector<128x384xbf16>, vector<8x384xf32> -> vector<8x384xf32>
    %61 = vector.extract_strided_slice %57 {offsets = [0, 0], sizes = [8, 128], strides = [1, 1]} : vector<8x384xf32> to vector<8x128xf32>
    %62 = vector.extract_strided_slice %60 {offsets = [0, 0], sizes = [8, 128], strides = [1, 1]} : vector<8x384xf32> to vector<8x128xf32>
    %63 = arith.addf %61, %62 : vector<8x128xf32>
    %64 = arith.negf %63 : vector<8x128xf32>
    %65 = math.exp %64 : vector<8x128xf32>
    %cst_22 = arith.constant 1.000000e+00 : f32
    %66 = vector.broadcast %cst_22 : f32 to vector<8x128xf32>
    %67 = arith.addf %66, %65 : vector<8x128xf32>
    %68 = arith.divf %66, %67 : vector<8x128xf32>
    %69 = vector.extract_strided_slice %57 {offsets = [0, 128], sizes = [8, 128], strides = [1, 1]} : vector<8x384xf32> to vector<8x128xf32>
    %70 = vector.extract_strided_slice %60 {offsets = [0, 128], sizes = [8, 128], strides = [1, 1]} : vector<8x384xf32> to vector<8x128xf32>
    %71 = arith.addf %69, %70 : vector<8x128xf32>
    %72 = arith.negf %71 : vector<8x128xf32>
    %73 = math.exp %72 : vector<8x128xf32>
    %cst_23 = arith.constant 1.000000e+00 : f32
    %74 = vector.broadcast %cst_23 : f32 to vector<8x128xf32>
    %75 = arith.addf %74, %73 : vector<8x128xf32>
    %76 = arith.divf %74, %75 : vector<8x128xf32>
    %77 = vector.extract_strided_slice %57 {offsets = [0, 256], sizes = [8, 128], strides = [1, 1]} : vector<8x384xf32> to vector<8x128xf32>
    %78 = vector.extract_strided_slice %60 {offsets = [0, 256], sizes = [8, 128], strides = [1, 1]} : vector<8x384xf32> to vector<8x128xf32>
    %79 = vector.broadcast %4 : vector<1x128xf32> to vector<8x128xf32>
    %80 = arith.addf %78, %79 : vector<8x128xf32>
    %81 = arith.mulf %68, %80 : vector<8x128xf32>
    %82 = arith.addf %77, %81 : vector<8x128xf32>
    %83 = math.tanh %82 : vector<8x128xf32>
    %cst_24 = arith.constant 1.000000e+00 : f32
    %84 = vector.broadcast %cst_24 : f32 to vector<8x128xf32>
    %85 = arith.subf %84, %76 : vector<8x128xf32>
    %86 = arith.mulf %85, %83 : vector<8x128xf32>
    %87 = arith.mulf %76, %54 : vector<8x128xf32>
    %88 = arith.addf %86, %87 : vector<8x128xf32>
    %89 = arith.addi %5, %c1_i32 : i32
    %90 = vector.broadcast %89 : i32 to vector<8x1xi32>
    %91 = arith.cmpi sgt, %3, %90 : vector<8x1xi32>
    %cst_25 = arith.constant 0.000000e+00 : f32
    %92 = vector.shape_cast %91 : vector<8x1xi1> to vector<8x1xi1>
    %93 = vector.broadcast %92 : vector<8x1xi1> to vector<8x128xi1>
    %94 = vector.broadcast %cst_25 : f32 to vector<8x128xf32>
    %95 = arith.select %93, %88, %94 : vector<8x128xi1>, vector<8x128xf32>
    %96 = arith.index_cast %c1_i32 : i32 to index
    %c0_26 = arith.constant 0 : index
    %c0_27 = arith.constant 0 : index
    %97 = vector.load %arg5[%96, %c0_26, %c0_27] : memref<8x8x128xf32, #tpu.memory_space<vmem>>, vector<1x8x128xf32>
    %98 = vector.shape_cast %97 : vector<1x8x128xf32> to vector<8x128xf32>
    %99 = vector.shape_cast %95 : vector<8x128xf32> to vector<1x8x128xf32>
    tpu.vector_store %arg5[%96, %c0_26, %c0_27], %99 {strides = array<i32>} : memref<8x8x128xf32, #tpu.memory_space<vmem>>, vector<1x8x128xf32>,
    %100 = vector.shape_cast %91 : vector<8x1xi1> to vector<8x1xi1>
    %101 = vector.broadcast %100 : vector<8x1xi1> to vector<8x128xi1>
    %102 = arith.select %101, %88, %54 : vector<8x128xi1>, vector<8x128xf32>
    %c2_i32 = arith.constant 2 : i32
    %103 = arith.index_cast %c2_i32 : i32 to index
    %c0_28 = arith.constant 0 : index
    %c0_29 = arith.constant 0 : index
    %104 = vector.load %arg2[%103, %c0_28, %c0_29] : memref<8x8x384xf32, #tpu.memory_space<vmem>>, vector<1x8x384xf32>
    %105 = vector.shape_cast %104 : vector<1x8x384xf32> to vector<8x384xf32>
    %106 = arith.truncf %102 : vector<8x128xf32> to vector<8x128xbf16>
    %c0_30 = arith.constant 0 : index
    %c0_31 = arith.constant 0 : index
    %107 = vector.load %arg3[%c0_30, %c0_31] : memref<128x384xbf16, #tpu.memory_space<vmem>>, vector<128x384xbf16>
    %cst_32 = arith.constant dense<0.000000e+00> : vector<8x384xf32>
    %108 = tpu.matmul %106, %107, %cst_32 {dimension_numbers = #tpu.dot_dimension_numbers<[1], [0], [0], [1], [0, 0, 1, 1], [], []>} : vector<8x128xbf16>, vector<128x384xbf16>, vector<8x384xf32> -> vector<8x384xf32>
    %109 = vector.extract_strided_slice %105 {offsets = [0, 0], sizes = [8, 128], strides = [1, 1]} : vector<8x384xf32> to vector<8x128xf32>
    %110 = vector.extract_strided_slice %108 {offsets = [0, 0], sizes = [8, 128], strides = [1, 1]} : vector<8x384xf32> to vector<8x128xf32>
    %111 = arith.addf %109, %110 : vector<8x128xf32>
    %112 = arith.negf %111 : vector<8x128xf32>
    %113 = math.exp %112 : vector<8x128xf32>
    %cst_33 = arith.constant 1.000000e+00 : f32
    %114 = vector.broadcast %cst_33 : f32 to vector<8x128xf32>
    %115 = arith.addf %114, %113 : vector<8x128xf32>
    %116 = arith.divf %114, %115 : vector<8x128xf32>
    %117 = vector.extract_strided_slice %105 {offsets = [0, 128], sizes = [8, 128], strides = [1, 1]} : vector<8x384xf32> to vector<8x128xf32>
    %118 = vector.extract_strided_slice %108 {offsets = [0, 128], sizes = [8, 128], strides = [1, 1]} : vector<8x384xf32> to vector<8x128xf32>
    %119 = arith.addf %117, %118 : vector<8x128xf32>
    %120 = arith.negf %119 : vector<8x128xf32>
    %121 = math.exp %120 : vector<8x128xf32>
    %cst_34 = arith.constant 1.000000e+00 : f32
    %122 = vector.broadcast %cst_34 : f32 to vector<8x128xf32>
    %123 = arith.addf %122, %121 : vector<8x128xf32>
    %124 = arith.divf %122, %123 : vector<8x128xf32>
    %125 = vector.extract_strided_slice %105 {offsets = [0, 256], sizes = [8, 128], strides = [1, 1]} : vector<8x384xf32> to vector<8x128xf32>
    %126 = vector.extract_strided_slice %108 {offsets = [0, 256], sizes = [8, 128], strides = [1, 1]} : vector<8x384xf32> to vector<8x128xf32>
    %127 = vector.broadcast %4 : vector<1x128xf32> to vector<8x128xf32>
    %128 = arith.addf %126, %127 : vector<8x128xf32>
    %129 = arith.mulf %116, %128 : vector<8x128xf32>
    %130 = arith.addf %125, %129 : vector<8x128xf32>
    %131 = math.tanh %130 : vector<8x128xf32>
    %cst_35 = arith.constant 1.000000e+00 : f32
    %132 = vector.broadcast %cst_35 : f32 to vector<8x128xf32>
    %133 = arith.subf %132, %124 : vector<8x128xf32>
    %134 = arith.mulf %133, %131 : vector<8x128xf32>
    %135 = arith.mulf %124, %102 : vector<8x128xf32>
    %136 = arith.addf %134, %135 : vector<8x128xf32>
    %137 = arith.addi %5, %c2_i32 : i32
    %138 = vector.broadcast %137 : i32 to vector<8x1xi32>
    %139 = arith.cmpi sgt, %3, %138 : vector<8x1xi32>
    %cst_36 = arith.constant 0.000000e+00 : f32
    %140 = vector.shape_cast %139 : vector<8x1xi1> to vector<8x1xi1>
    %141 = vector.broadcast %140 : vector<8x1xi1> to vector<8x128xi1>
    %142 = vector.broadcast %cst_36 : f32 to vector<8x128xf32>
    %143 = arith.select %141, %136, %142 : vector<8x128xi1>, vector<8x128xf32>
    %144 = arith.index_cast %c2_i32 : i32 to index
    %c0_37 = arith.constant 0 : index
    %c0_38 = arith.constant 0 : index
    %145 = vector.load %arg5[%144, %c0_37, %c0_38] : memref<8x8x128xf32, #tpu.memory_space<vmem>>, vector<1x8x128xf32>
    %146 = vector.shape_cast %145 : vector<1x8x128xf32> to vector<8x128xf32>
    %147 = vector.shape_cast %143 : vector<8x128xf32> to vector<1x8x128xf32>
    tpu.vector_store %arg5[%144, %c0_37, %c0_38], %147 {strides = array<i32>} : memref<8x8x128xf32, #tpu.memory_space<vmem>>, vector<1x8x128xf32>,
    %148 = vector.shape_cast %139 : vector<8x1xi1> to vector<8x1xi1>
    %149 = vector.broadcast %148 : vector<8x1xi1> to vector<8x128xi1>
    %150 = arith.select %149, %136, %102 : vector<8x128xi1>, vector<8x128xf32>
    %c3_i32 = arith.constant 3 : i32
    %151 = arith.index_cast %c3_i32 : i32 to index
    %c0_39 = arith.constant 0 : index
    %c0_40 = arith.constant 0 : index
    %152 = vector.load %arg2[%151, %c0_39, %c0_40] : memref<8x8x384xf32, #tpu.memory_space<vmem>>, vector<1x8x384xf32>
    %153 = vector.shape_cast %152 : vector<1x8x384xf32> to vector<8x384xf32>
    %154 = arith.truncf %150 : vector<8x128xf32> to vector<8x128xbf16>
    %c0_41 = arith.constant 0 : index
    %c0_42 = arith.constant 0 : index
    %155 = vector.load %arg3[%c0_41, %c0_42] : memref<128x384xbf16, #tpu.memory_space<vmem>>, vector<128x384xbf16>
    %cst_43 = arith.constant dense<0.000000e+00> : vector<8x384xf32>
    %156 = tpu.matmul %154, %155, %cst_43 {dimension_numbers = #tpu.dot_dimension_numbers<[1], [0], [0], [1], [0, 0, 1, 1], [], []>} : vector<8x128xbf16>, vector<128x384xbf16>, vector<8x384xf32> -> vector<8x384xf32>
    %157 = vector.extract_strided_slice %153 {offsets = [0, 0], sizes = [8, 128], strides = [1, 1]} : vector<8x384xf32> to vector<8x128xf32>
    %158 = vector.extract_strided_slice %156 {offsets = [0, 0], sizes = [8, 128], strides = [1, 1]} : vector<8x384xf32> to vector<8x128xf32>
    %159 = arith.addf %157, %158 : vector<8x128xf32>
    %160 = arith.negf %159 : vector<8x128xf32>
    %161 = math.exp %160 : vector<8x128xf32>
    %cst_44 = arith.constant 1.000000e+00 : f32
    %162 = vector.broadcast %cst_44 : f32 to vector<8x128xf32>
    %163 = arith.addf %162, %161 : vector<8x128xf32>
    %164 = arith.divf %162, %163 : vector<8x128xf32>
    %165 = vector.extract_strided_slice %153 {offsets = [0, 128], sizes = [8, 128], strides = [1, 1]} : vector<8x384xf32> to vector<8x128xf32>
    %166 = vector.extract_strided_slice %156 {offsets = [0, 128], sizes = [8, 128], strides = [1, 1]} : vector<8x384xf32> to vector<8x128xf32>
    %167 = arith.addf %165, %166 : vector<8x128xf32>
    %168 = arith.negf %167 : vector<8x128xf32>
    %169 = math.exp %168 : vector<8x128xf32>
    %cst_45 = arith.constant 1.000000e+00 : f32
    %170 = vector.broadcast %cst_45 : f32 to vector<8x128xf32>
    %171 = arith.addf %170, %169 : vector<8x128xf32>
    %172 = arith.divf %170, %171 : vector<8x128xf32>
    %173 = vector.extract_strided_slice %153 {offsets = [0, 256], sizes = [8, 128], strides = [1, 1]} : vector<8x384xf32> to vector<8x128xf32>
    %174 = vector.extract_strided_slice %156 {offsets = [0, 256], sizes = [8, 128], strides = [1, 1]} : vector<8x384xf32> to vector<8x128xf32>
    %175 = vector.broadcast %4 : vector<1x128xf32> to vector<8x128xf32>
    %176 = arith.addf %174, %175 : vector<8x128xf32>
    %177 = arith.mulf %164, %176 : vector<8x128xf32>
    %178 = arith.addf %173, %177 : vector<8x128xf32>
    %179 = math.tanh %178 : vector<8x128xf32>
    %cst_46 = arith.constant 1.000000e+00 : f32
    %180 = vector.broadcast %cst_46 : f32 to vector<8x128xf32>
    %181 = arith.subf %180, %172 : vector<8x128xf32>
    %182 = arith.mulf %181, %179 : vector<8x128xf32>
    %183 = arith.mulf %172, %150 : vector<8x128xf32>
    %184 = arith.addf %182, %183 : vector<8x128xf32>
    %185 = arith.addi %5, %c3_i32 : i32
    %186 = vector.broadcast %185 : i32 to vector<8x1xi32>
    %187 = arith.cmpi sgt, %3, %186 : vector<8x1xi32>
    %cst_47 = arith.constant 0.000000e+00 : f32
    %188 = vector.shape_cast %187 : vector<8x1xi1> to vector<8x1xi1>
    %189 = vector.broadcast %188 : vector<8x1xi1> to vector<8x128xi1>
    %190 = vector.broadcast %cst_47 : f32 to vector<8x128xf32>
    %191 = arith.select %189, %184, %190 : vector<8x128xi1>, vector<8x128xf32>
    %192 = arith.index_cast %c3_i32 : i32 to index
    %c0_48 = arith.constant 0 : index
    %c0_49 = arith.constant 0 : index
    %193 = vector.load %arg5[%192, %c0_48, %c0_49] : memref<8x8x128xf32, #tpu.memory_space<vmem>>, vector<1x8x128xf32>
    %194 = vector.shape_cast %193 : vector<1x8x128xf32> to vector<8x128xf32>
    %195 = vector.shape_cast %191 : vector<8x128xf32> to vector<1x8x128xf32>
    tpu.vector_store %arg5[%192, %c0_48, %c0_49], %195 {strides = array<i32>} : memref<8x8x128xf32, #tpu.memory_space<vmem>>, vector<1x8x128xf32>,
    %196 = vector.shape_cast %187 : vector<8x1xi1> to vector<8x1xi1>
    %197 = vector.broadcast %196 : vector<8x1xi1> to vector<8x128xi1>
    %198 = arith.select %197, %184, %150 : vector<8x128xi1>, vector<8x128xf32>
    %c4_i32 = arith.constant 4 : i32
    %199 = arith.index_cast %c4_i32 : i32 to index
    %c0_50 = arith.constant 0 : index
    %c0_51 = arith.constant 0 : index
    %200 = vector.load %arg2[%199, %c0_50, %c0_51] : memref<8x8x384xf32, #tpu.memory_space<vmem>>, vector<1x8x384xf32>
    %201 = vector.shape_cast %200 : vector<1x8x384xf32> to vector<8x384xf32>
    %202 = arith.truncf %198 : vector<8x128xf32> to vector<8x128xbf16>
    %c0_52 = arith.constant 0 : index
    %c0_53 = arith.constant 0 : index
    %203 = vector.load %arg3[%c0_52, %c0_53] : memref<128x384xbf16, #tpu.memory_space<vmem>>, vector<128x384xbf16>
    %cst_54 = arith.constant dense<0.000000e+00> : vector<8x384xf32>
    %204 = tpu.matmul %202, %203, %cst_54 {dimension_numbers = #tpu.dot_dimension_numbers<[1], [0], [0], [1], [0, 0, 1, 1], [], []>} : vector<8x128xbf16>, vector<128x384xbf16>, vector<8x384xf32> -> vector<8x384xf32>
    %205 = vector.extract_strided_slice %201 {offsets = [0, 0], sizes = [8, 128], strides = [1, 1]} : vector<8x384xf32> to vector<8x128xf32>
    %206 = vector.extract_strided_slice %204 {offsets = [0, 0], sizes = [8, 128], strides = [1, 1]} : vector<8x384xf32> to vector<8x128xf32>
    %207 = arith.addf %205, %206 : vector<8x128xf32>
    %208 = arith.negf %207 : vector<8x128xf32>
    %209 = math.exp %208 : vector<8x128xf32>
    %cst_55 = arith.constant 1.000000e+00 : f32
    %210 = vector.broadcast %cst_55 : f32 to vector<8x128xf32>
    %211 = arith.addf %210, %209 : vector<8x128xf32>
    %212 = arith.divf %210, %211 : vector<8x128xf32>
    %213 = vector.extract_strided_slice %201 {offsets = [0, 128], sizes = [8, 128], strides = [1, 1]} : vector<8x384xf32> to vector<8x128xf32>
    %214 = vector.extract_strided_slice %204 {offsets = [0, 128], sizes = [8, 128], strides = [1, 1]} : vector<8x384xf32> to vector<8x128xf32>
    %215 = arith.addf %213, %214 : vector<8x128xf32>
    %216 = arith.negf %215 : vector<8x128xf32>
    %217 = math.exp %216 : vector<8x128xf32>
    %cst_56 = arith.constant 1.000000e+00 : f32
    %218 = vector.broadcast %cst_56 : f32 to vector<8x128xf32>
    %219 = arith.addf %218, %217 : vector<8x128xf32>
    %220 = arith.divf %218, %219 : vector<8x128xf32>
    %221 = vector.extract_strided_slice %201 {offsets = [0, 256], sizes = [8, 128], strides = [1, 1]} : vector<8x384xf32> to vector<8x128xf32>
    %222 = vector.extract_strided_slice %204 {offsets = [0, 256], sizes = [8, 128], strides = [1, 1]} : vector<8x384xf32> to vector<8x128xf32>
    %223 = vector.broadcast %4 : vector<1x128xf32> to vector<8x128xf32>
    %224 = arith.addf %222, %223 : vector<8x128xf32>
    %225 = arith.mulf %212, %224 : vector<8x128xf32>
    %226 = arith.addf %221, %225 : vector<8x128xf32>
    %227 = math.tanh %226 : vector<8x128xf32>
    %cst_57 = arith.constant 1.000000e+00 : f32
    %228 = vector.broadcast %cst_57 : f32 to vector<8x128xf32>
    %229 = arith.subf %228, %220 : vector<8x128xf32>
    %230 = arith.mulf %229, %227 : vector<8x128xf32>
    %231 = arith.mulf %220, %198 : vector<8x128xf32>
    %232 = arith.addf %230, %231 : vector<8x128xf32>
    %233 = arith.addi %5, %c4_i32 : i32
    %234 = vector.broadcast %233 : i32 to vector<8x1xi32>
    %235 = arith.cmpi sgt, %3, %234 : vector<8x1xi32>
    %cst_58 = arith.constant 0.000000e+00 : f32
    %236 = vector.shape_cast %235 : vector<8x1xi1> to vector<8x1xi1>
    %237 = vector.broadcast %236 : vector<8x1xi1> to vector<8x128xi1>
    %238 = vector.broadcast %cst_58 : f32 to vector<8x128xf32>
    %239 = arith.select %237, %232, %238 : vector<8x128xi1>, vector<8x128xf32>
    %240 = arith.index_cast %c4_i32 : i32 to index
    %c0_59 = arith.constant 0 : index
    %c0_60 = arith.constant 0 : index
    %241 = vector.load %arg5[%240, %c0_59, %c0_60] : memref<8x8x128xf32, #tpu.memory_space<vmem>>, vector<1x8x128xf32>
    %242 = vector.shape_cast %241 : vector<1x8x128xf32> to vector<8x128xf32>
    %243 = vector.shape_cast %239 : vector<8x128xf32> to vector<1x8x128xf32>
    tpu.vector_store %arg5[%240, %c0_59, %c0_60], %243 {strides = array<i32>} : memref<8x8x128xf32, #tpu.memory_space<vmem>>, vector<1x8x128xf32>,
    %244 = vector.shape_cast %235 : vector<8x1xi1> to vector<8x1xi1>
    %245 = vector.broadcast %244 : vector<8x1xi1> to vector<8x128xi1>
    %246 = arith.select %245, %232, %198 : vector<8x128xi1>, vector<8x128xf32>
    %c5_i32 = arith.constant 5 : i32
    %247 = arith.index_cast %c5_i32 : i32 to index
    %c0_61 = arith.constant 0 : index
    %c0_62 = arith.constant 0 : index
    %248 = vector.load %arg2[%247, %c0_61, %c0_62] : memref<8x8x384xf32, #tpu.memory_space<vmem>>, vector<1x8x384xf32>
    %249 = vector.shape_cast %248 : vector<1x8x384xf32> to vector<8x384xf32>
    %250 = arith.truncf %246 : vector<8x128xf32> to vector<8x128xbf16>
    %c0_63 = arith.constant 0 : index
    %c0_64 = arith.constant 0 : index
    %251 = vector.load %arg3[%c0_63, %c0_64] : memref<128x384xbf16, #tpu.memory_space<vmem>>, vector<128x384xbf16>
    %cst_65 = arith.constant dense<0.000000e+00> : vector<8x384xf32>
    %252 = tpu.matmul %250, %251, %cst_65 {dimension_numbers = #tpu.dot_dimension_numbers<[1], [0], [0], [1], [0, 0, 1, 1], [], []>} : vector<8x128xbf16>, vector<128x384xbf16>, vector<8x384xf32> -> vector<8x384xf32>
    %253 = vector.extract_strided_slice %249 {offsets = [0, 0], sizes = [8, 128], strides = [1, 1]} : vector<8x384xf32> to vector<8x128xf32>
    %254 = vector.extract_strided_slice %252 {offsets = [0, 0], sizes = [8, 128], strides = [1, 1]} : vector<8x384xf32> to vector<8x128xf32>
    %255 = arith.addf %253, %254 : vector<8x128xf32>
    %256 = arith.negf %255 : vector<8x128xf32>
    %257 = math.exp %256 : vector<8x128xf32>
    %cst_66 = arith.constant 1.000000e+00 : f32
    %258 = vector.broadcast %cst_66 : f32 to vector<8x128xf32>
    %259 = arith.addf %258, %257 : vector<8x128xf32>
    %260 = arith.divf %258, %259 : vector<8x128xf32>
    %261 = vector.extract_strided_slice %249 {offsets = [0, 128], sizes = [8, 128], strides = [1, 1]} : vector<8x384xf32> to vector<8x128xf32>
    %262 = vector.extract_strided_slice %252 {offsets = [0, 128], sizes = [8, 128], strides = [1, 1]} : vector<8x384xf32> to vector<8x128xf32>
    %263 = arith.addf %261, %262 : vector<8x128xf32>
    %264 = arith.negf %263 : vector<8x128xf32>
    %265 = math.exp %264 : vector<8x128xf32>
    %cst_67 = arith.constant 1.000000e+00 : f32
    %266 = vector.broadcast %cst_67 : f32 to vector<8x128xf32>
    %267 = arith.addf %266, %265 : vector<8x128xf32>
    %268 = arith.divf %266, %267 : vector<8x128xf32>
    %269 = vector.extract_strided_slice %249 {offsets = [0, 256], sizes = [8, 128], strides = [1, 1]} : vector<8x384xf32> to vector<8x128xf32>
    %270 = vector.extract_strided_slice %252 {offsets = [0, 256], sizes = [8, 128], strides = [1, 1]} : vector<8x384xf32> to vector<8x128xf32>
    %271 = vector.broadcast %4 : vector<1x128xf32> to vector<8x128xf32>
    %272 = arith.addf %270, %271 : vector<8x128xf32>
    %273 = arith.mulf %260, %272 : vector<8x128xf32>
    %274 = arith.addf %269, %273 : vector<8x128xf32>
    %275 = math.tanh %274 : vector<8x128xf32>
    %cst_68 = arith.constant 1.000000e+00 : f32
    %276 = vector.broadcast %cst_68 : f32 to vector<8x128xf32>
    %277 = arith.subf %276, %268 : vector<8x128xf32>
    %278 = arith.mulf %277, %275 : vector<8x128xf32>
    %279 = arith.mulf %268, %246 : vector<8x128xf32>
    %280 = arith.addf %278, %279 : vector<8x128xf32>
    %281 = arith.addi %5, %c5_i32 : i32
    %282 = vector.broadcast %281 : i32 to vector<8x1xi32>
    %283 = arith.cmpi sgt, %3, %282 : vector<8x1xi32>
    %cst_69 = arith.constant 0.000000e+00 : f32
    %284 = vector.shape_cast %283 : vector<8x1xi1> to vector<8x1xi1>
    %285 = vector.broadcast %284 : vector<8x1xi1> to vector<8x128xi1>
    %286 = vector.broadcast %cst_69 : f32 to vector<8x128xf32>
    %287 = arith.select %285, %280, %286 : vector<8x128xi1>, vector<8x128xf32>
    %288 = arith.index_cast %c5_i32 : i32 to index
    %c0_70 = arith.constant 0 : index
    %c0_71 = arith.constant 0 : index
    %289 = vector.load %arg5[%288, %c0_70, %c0_71] : memref<8x8x128xf32, #tpu.memory_space<vmem>>, vector<1x8x128xf32>
    %290 = vector.shape_cast %289 : vector<1x8x128xf32> to vector<8x128xf32>
    %291 = vector.shape_cast %287 : vector<8x128xf32> to vector<1x8x128xf32>
    tpu.vector_store %arg5[%288, %c0_70, %c0_71], %291 {strides = array<i32>} : memref<8x8x128xf32, #tpu.memory_space<vmem>>, vector<1x8x128xf32>,
    %292 = vector.shape_cast %283 : vector<8x1xi1> to vector<8x1xi1>
    %293 = vector.broadcast %292 : vector<8x1xi1> to vector<8x128xi1>
    %294 = arith.select %293, %280, %246 : vector<8x128xi1>, vector<8x128xf32>
    %c6_i32 = arith.constant 6 : i32
    %295 = arith.index_cast %c6_i32 : i32 to index
    %c0_72 = arith.constant 0 : index
    %c0_73 = arith.constant 0 : index
    %296 = vector.load %arg2[%295, %c0_72, %c0_73] : memref<8x8x384xf32, #tpu.memory_space<vmem>>, vector<1x8x384xf32>
    %297 = vector.shape_cast %296 : vector<1x8x384xf32> to vector<8x384xf32>
    %298 = arith.truncf %294 : vector<8x128xf32> to vector<8x128xbf16>
    %c0_74 = arith.constant 0 : index
    %c0_75 = arith.constant 0 : index
    %299 = vector.load %arg3[%c0_74, %c0_75] : memref<128x384xbf16, #tpu.memory_space<vmem>>, vector<128x384xbf16>
    %cst_76 = arith.constant dense<0.000000e+00> : vector<8x384xf32>
    %300 = tpu.matmul %298, %299, %cst_76 {dimension_numbers = #tpu.dot_dimension_numbers<[1], [0], [0], [1], [0, 0, 1, 1], [], []>} : vector<8x128xbf16>, vector<128x384xbf16>, vector<8x384xf32> -> vector<8x384xf32>
    %301 = vector.extract_strided_slice %297 {offsets = [0, 0], sizes = [8, 128], strides = [1, 1]} : vector<8x384xf32> to vector<8x128xf32>
    %302 = vector.extract_strided_slice %300 {offsets = [0, 0], sizes = [8, 128], strides = [1, 1]} : vector<8x384xf32> to vector<8x128xf32>
    %303 = arith.addf %301, %302 : vector<8x128xf32>
    %304 = arith.negf %303 : vector<8x128xf32>
    %305 = math.exp %304 : vector<8x128xf32>
    %cst_77 = arith.constant 1.000000e+00 : f32
    %306 = vector.broadcast %cst_77 : f32 to vector<8x128xf32>
    %307 = arith.addf %306, %305 : vector<8x128xf32>
    %308 = arith.divf %306, %307 : vector<8x128xf32>
    %309 = vector.extract_strided_slice %297 {offsets = [0, 128], sizes = [8, 128], strides = [1, 1]} : vector<8x384xf32> to vector<8x128xf32>
    %310 = vector.extract_strided_slice %300 {offsets = [0, 128], sizes = [8, 128], strides = [1, 1]} : vector<8x384xf32> to vector<8x128xf32>
    %311 = arith.addf %309, %310 : vector<8x128xf32>
    %312 = arith.negf %311 : vector<8x128xf32>
    %313 = math.exp %312 : vector<8x128xf32>
    %cst_78 = arith.constant 1.000000e+00 : f32
    %314 = vector.broadcast %cst_78 : f32 to vector<8x128xf32>
    %315 = arith.addf %314, %313 : vector<8x128xf32>
    %316 = arith.divf %314, %315 : vector<8x128xf32>
    %317 = vector.extract_strided_slice %297 {offsets = [0, 256], sizes = [8, 128], strides = [1, 1]} : vector<8x384xf32> to vector<8x128xf32>
    %318 = vector.extract_strided_slice %300 {offsets = [0, 256], sizes = [8, 128], strides = [1, 1]} : vector<8x384xf32> to vector<8x128xf32>
    %319 = vector.broadcast %4 : vector<1x128xf32> to vector<8x128xf32>
    %320 = arith.addf %318, %319 : vector<8x128xf32>
    %321 = arith.mulf %308, %320 : vector<8x128xf32>
    %322 = arith.addf %317, %321 : vector<8x128xf32>
    %323 = math.tanh %322 : vector<8x128xf32>
    %cst_79 = arith.constant 1.000000e+00 : f32
    %324 = vector.broadcast %cst_79 : f32 to vector<8x128xf32>
    %325 = arith.subf %324, %316 : vector<8x128xf32>
    %326 = arith.mulf %325, %323 : vector<8x128xf32>
    %327 = arith.mulf %316, %294 : vector<8x128xf32>
    %328 = arith.addf %326, %327 : vector<8x128xf32>
    %329 = arith.addi %5, %c6_i32 : i32
    %330 = vector.broadcast %329 : i32 to vector<8x1xi32>
    %331 = arith.cmpi sgt, %3, %330 : vector<8x1xi32>
    %cst_80 = arith.constant 0.000000e+00 : f32
    %332 = vector.shape_cast %331 : vector<8x1xi1> to vector<8x1xi1>
    %333 = vector.broadcast %332 : vector<8x1xi1> to vector<8x128xi1>
    %334 = vector.broadcast %cst_80 : f32 to vector<8x128xf32>
    %335 = arith.select %333, %328, %334 : vector<8x128xi1>, vector<8x128xf32>
    %336 = arith.index_cast %c6_i32 : i32 to index
    %c0_81 = arith.constant 0 : index
    %c0_82 = arith.constant 0 : index
    %337 = vector.load %arg5[%336, %c0_81, %c0_82] : memref<8x8x128xf32, #tpu.memory_space<vmem>>, vector<1x8x128xf32>
    %338 = vector.shape_cast %337 : vector<1x8x128xf32> to vector<8x128xf32>
    %339 = vector.shape_cast %335 : vector<8x128xf32> to vector<1x8x128xf32>
    tpu.vector_store %arg5[%336, %c0_81, %c0_82], %339 {strides = array<i32>} : memref<8x8x128xf32, #tpu.memory_space<vmem>>, vector<1x8x128xf32>,
    %340 = vector.shape_cast %331 : vector<8x1xi1> to vector<8x1xi1>
    %341 = vector.broadcast %340 : vector<8x1xi1> to vector<8x128xi1>
    %342 = arith.select %341, %328, %294 : vector<8x128xi1>, vector<8x128xf32>
    %c7_i32 = arith.constant 7 : i32
    %343 = arith.index_cast %c7_i32 : i32 to index
    %c0_83 = arith.constant 0 : index
    %c0_84 = arith.constant 0 : index
    %344 = vector.load %arg2[%343, %c0_83, %c0_84] : memref<8x8x384xf32, #tpu.memory_space<vmem>>, vector<1x8x384xf32>
    %345 = vector.shape_cast %344 : vector<1x8x384xf32> to vector<8x384xf32>
    %346 = arith.truncf %342 : vector<8x128xf32> to vector<8x128xbf16>
    %c0_85 = arith.constant 0 : index
    %c0_86 = arith.constant 0 : index
    %347 = vector.load %arg3[%c0_85, %c0_86] : memref<128x384xbf16, #tpu.memory_space<vmem>>, vector<128x384xbf16>
    %cst_87 = arith.constant dense<0.000000e+00> : vector<8x384xf32>
    %348 = tpu.matmul %346, %347, %cst_87 {dimension_numbers = #tpu.dot_dimension_numbers<[1], [0], [0], [1], [0, 0, 1, 1], [], []>} : vector<8x128xbf16>, vector<128x384xbf16>, vector<8x384xf32> -> vector<8x384xf32>
    %349 = vector.extract_strided_slice %345 {offsets = [0, 0], sizes = [8, 128], strides = [1, 1]} : vector<8x384xf32> to vector<8x128xf32>
    %350 = vector.extract_strided_slice %348 {offsets = [0, 0], sizes = [8, 128], strides = [1, 1]} : vector<8x384xf32> to vector<8x128xf32>
    %351 = arith.addf %349, %350 : vector<8x128xf32>
    %352 = arith.negf %351 : vector<8x128xf32>
    %353 = math.exp %352 : vector<8x128xf32>
    %cst_88 = arith.constant 1.000000e+00 : f32
    %354 = vector.broadcast %cst_88 : f32 to vector<8x128xf32>
    %355 = arith.addf %354, %353 : vector<8x128xf32>
    %356 = arith.divf %354, %355 : vector<8x128xf32>
    %357 = vector.extract_strided_slice %345 {offsets = [0, 128], sizes = [8, 128], strides = [1, 1]} : vector<8x384xf32> to vector<8x128xf32>
    %358 = vector.extract_strided_slice %348 {offsets = [0, 128], sizes = [8, 128], strides = [1, 1]} : vector<8x384xf32> to vector<8x128xf32>
    %359 = arith.addf %357, %358 : vector<8x128xf32>
    %360 = arith.negf %359 : vector<8x128xf32>
    %361 = math.exp %360 : vector<8x128xf32>
    %cst_89 = arith.constant 1.000000e+00 : f32
    %362 = vector.broadcast %cst_89 : f32 to vector<8x128xf32>
    %363 = arith.addf %362, %361 : vector<8x128xf32>
    %364 = arith.divf %362, %363 : vector<8x128xf32>
    %365 = vector.extract_strided_slice %345 {offsets = [0, 256], sizes = [8, 128], strides = [1, 1]} : vector<8x384xf32> to vector<8x128xf32>
    %366 = vector.extract_strided_slice %348 {offsets = [0, 256], sizes = [8, 128], strides = [1, 1]} : vector<8x384xf32> to vector<8x128xf32>
    %367 = vector.broadcast %4 : vector<1x128xf32> to vector<8x128xf32>
    %368 = arith.addf %366, %367 : vector<8x128xf32>
    %369 = arith.mulf %356, %368 : vector<8x128xf32>
    %370 = arith.addf %365, %369 : vector<8x128xf32>
    %371 = math.tanh %370 : vector<8x128xf32>
    %cst_90 = arith.constant 1.000000e+00 : f32
    %372 = vector.broadcast %cst_90 : f32 to vector<8x128xf32>
    %373 = arith.subf %372, %364 : vector<8x128xf32>
    %374 = arith.mulf %373, %371 : vector<8x128xf32>
    %375 = arith.mulf %364, %342 : vector<8x128xf32>
    %376 = arith.addf %374, %375 : vector<8x128xf32>
    %377 = arith.addi %5, %c7_i32 : i32
    %378 = vector.broadcast %377 : i32 to vector<8x1xi32>
    %379 = arith.cmpi sgt, %3, %378 : vector<8x1xi32>
    %cst_91 = arith.constant 0.000000e+00 : f32
    %380 = vector.shape_cast %379 : vector<8x1xi1> to vector<8x1xi1>
    %381 = vector.broadcast %380 : vector<8x1xi1> to vector<8x128xi1>
    %382 = vector.broadcast %cst_91 : f32 to vector<8x128xf32>
    %383 = arith.select %381, %376, %382 : vector<8x128xi1>, vector<8x128xf32>
    %384 = arith.index_cast %c7_i32 : i32 to index
    %c0_92 = arith.constant 0 : index
    %c0_93 = arith.constant 0 : index
    %385 = vector.load %arg5[%384, %c0_92, %c0_93] : memref<8x8x128xf32, #tpu.memory_space<vmem>>, vector<1x8x128xf32>
    %386 = vector.shape_cast %385 : vector<1x8x128xf32> to vector<8x128xf32>
    %387 = vector.shape_cast %383 : vector<8x128xf32> to vector<1x8x128xf32>
    tpu.vector_store %arg5[%384, %c0_92, %c0_93], %387 {strides = array<i32>} : memref<8x8x128xf32, #tpu.memory_space<vmem>>, vector<1x8x128xf32>,
    %388 = vector.shape_cast %379 : vector<8x1xi1> to vector<8x1xi1>
    %389 = vector.broadcast %388 : vector<8x1xi1> to vector<8x128xi1>
    %390 = arith.select %389, %376, %342 : vector<8x128xi1>, vector<8x128xf32>
    %c8_i32_94 = arith.constant 8 : i32
    %c0_95 = arith.constant 0 : index
    %c0_96 = arith.constant 0 : index
    %391 = vector.load %arg7[%c0_95, %c0_96] : memref<8x128xf32, #tpu.memory_space<vmem>>, vector<8x128xf32>
    tpu.vector_store %arg7[%c0_95, %c0_96], %390 {strides = array<i32>} : memref<8x128xf32, #tpu.memory_space<vmem>>, vector<8x128xf32>,
    %c0_97 = arith.constant 0 : index
    %c0_98 = arith.constant 0 : index
    %392 = vector.load %arg6[%c0_97, %c0_98] : memref<8x128xf32, #tpu.memory_space<vmem>>, vector<8x128xf32>
    tpu.vector_store %arg6[%c0_97, %c0_98], %390 {strides = array<i32>} : memref<8x128xf32, #tpu.memory_space<vmem>>, vector<8x128xf32>,
    return
  }
  func.func @transform_0(%arg0: i32) -> (i32, i32) {
    %c0_i32 = arith.constant 0 : i32
    %c0_i32_0 = arith.constant 0 : i32
    %c0_i32_1 = arith.constant 0 : i32
    return %c0_i32, %c0_i32_0 : i32, i32
  }
  func.func @transform_1(%arg0: i32) -> (i32, i32, i32) {
    %c0_i32 = arith.constant 0 : i32
    %c0_i32_0 = arith.constant 0 : i32
    %c0_i32_1 = arith.constant 0 : i32
    return %arg0, %c0_i32, %c0_i32_0 : i32, i32, i32
  }
  func.func @transform_2(%arg0: i32) -> (i32, i32) {
    %c0_i32 = arith.constant 0 : i32
    %c0_i32_0 = arith.constant 0 : i32
    %c0_i32_1 = arith.constant 0 : i32
    return %c0_i32, %c0_i32_0 : i32, i32
  }
  func.func @transform_3(%arg0: i32) -> (i32, i32) {
    %c0_i32 = arith.constant 0 : i32
    %c0_i32_0 = arith.constant 0 : i32
    %c0_i32_1 = arith.constant 0 : i32
    return %c0_i32, %c0_i32_0 : i32, i32
  }
  func.func @transform_4(%arg0: i32) -> (i32, i32, i32) {
    %c0_i32 = arith.constant 0 : i32
    %c0_i32_0 = arith.constant 0 : i32
    %c0_i32_1 = arith.constant 0 : i32
    return %arg0, %c0_i32, %c0_i32_0 : i32, i32, i32
  }
  func.func @transform_5(%arg0: i32) -> (i32, i32) {
    %c0_i32 = arith.constant 0 : i32
    %c0_i32_0 = arith.constant 0 : i32
    %c0_i32_1 = arith.constant 0 : i32
    return %c0_i32, %c0_i32_0 : i32, i32
  }
}

</mosaic_0001>

<bundles_post_ra>
// kernel: tpu_custom_call.1
= control target key start
LH: loop header
LB: loop body
LE: loop exit
PB: predicated region body
PF: predicated region fallthrough
CT: control target
= control target key end

     0   :  { %11 = vsyncpa [#allocation4], 0  ;;  %s3539_s0 = inlined_call_operand.vmem [shape: s32[8,1], index: 0, kind: input, shape index: {}]   ;;  %s3540_s1 = inlined_call_operand.hbm [shape: f32[8,8,384], index: 1, kind: input, shape index: {}]   ;;  %s3541_s2 = inlined_call_operand.hbm [shape: bf16[128,384], index: 2, kind: input, shape index: {}]   ;;  %s3542_s3 = inlined_call_operand.vmem [shape: f32[1,128], index: 3, kind: input, shape index: {}]   ;;  %s3543_s4 = inlined_call_operand.hbm [shape: f32[8,8,128], index: 4, kind: output, shape index: {0}]   ;;  %s3544_s5 = inlined_call_operand.hbm [shape: f32[8,128], index: 5, kind: output, shape index: {1}]  }
   0x1   :  { %12 = vsyncpa [#allocation7], 0 }
   0x2   :  { %13 = vsyncpa [#allocation5], 0 }
   0x3   :  { %14 = vsyncpa [#allocation10], 0  ;;  %s3088_s18 = smov [#allocation3]   ;;  %s2992_s22 = scalar_lea.hbm %s3540_s1, 3072 }
   0x4   :  { %s22_s19 = sshll.u32 %s3088_s18, 4  ;;  %p2993_p0 = scmp.ne.s32.totalorder %s3540_s1, %s2992_s22  ;;  %s23_s19 = int_to_ptr.vmem [resolvable:$true] %s22_s19 }
   0x5   :  { %p2996_p1 = scmp.lt.u32.totalorder %s2992_s22, %s3540_s1 }
   0x7   :  { %p2998_p2 = pnand %p2996_p1, %p2993_p0 }
   0x9   :  { %3001 = shalt.err (!%p2998_p2)
}
   0xa   :  { %s3002_s27 = scalar_lea.vmem %s23_s19, 3072  ;;  %p3007_p4 = scmp.lt.s32.totalorder %s23_s19, %s23_s19 }
   0xb   :  { %p3003_p3 = scmp.ne.s32.totalorder %s23_s19, %s3002_s27  ;;  %p3008_p5 = scmp.lt.s32.totalorder %s3002_s27, %s3002_s27 }
   0xd   :  { %p3009_p6 = por %p3008_p5, %p3007_p4 }
   0xf   :  { %p3010_p7 = pnand %p3009_p6, %p3003_p3 }
  0x11   :  { %3013 = shalt.err (!%p3010_p7)
}
  0x12   :  { %s3089_s28 = smov 384   ;;  %s3090_s29 = smov 24  }
  0x13   :  { %28 = dma.hbm_to_vmem [thread:$0]  %s3540_s1, 3072, %s23_s19, [#allocation4], %s3089_s28, %s3089_s28, %s3090_s29  }
  0x14   :  { %s3091_s7 = smov [#allocation6]   ;;  %s3014_s11 = scalar_lea.hbm %s3541_s2, 3072 }
  0x15   :  { %s34_s8 = sshll.u32 %s3091_s7, 4  ;;  %p3015_p8 = scmp.ne.s32.totalorder %s3541_s2, %s3014_s11  ;;  %s35_s8 = int_to_ptr.vmem [resolvable:$true] %s34_s8 }
  0x16   :  { %p3018_p9 = scmp.lt.u32.totalorder %s3014_s11, %s3541_s2 }
  0x18   :  { %p3020_p10 = pnand %p3018_p9, %p3015_p8 }
  0x1a   :  { %3023 = shalt.err (!%p3020_p10)
}
  0x1b   :  { %s3024_s16 = scalar_lea.vmem %s35_s8, 3072  ;;  %p3029_p12 = scmp.lt.s32.totalorder %s35_s8, %s35_s8 }
  0x1c   :  { %p3025_p11 = scmp.ne.s32.totalorder %s35_s8, %s3024_s16  ;;  %p3030_p13 = scmp.lt.s32.totalorder %s3024_s16, %s3024_s16 }
  0x1e   :  { %p3031_p0 = por %p3030_p13, %p3029_p12 }
  0x20   :  { %p3032_p1 = pnand %p3031_p0, %p3025_p11 }
  0x22   :  { %3035 = shalt.err (!%p3032_p1)
}
  0x23   :  { %s3092_s1 = smov 192   ;;  %s3093_s17 = smov 12  }
  0x24   :  { %40 = dma.hbm_to_vmem [thread:$0]  %s3541_s2, 3072, %s35_s8, [#allocation7], %s3092_s1, %s3092_s1, %s3093_s17  }
  0x25   :  { %3080 = dma.done.wait [#allocation4], 3072  }
  0x26   :  { %3081 = vsyncadd [#allocation4], 4294964224 }
  0x27   :  { %3082 = dma.done.wait [#allocation7], 3072  }
  0x28   :  { %3083 = vsyncadd [#allocation7], 4294964224  ;;  %v3094_v0 = vmov 0.0   ;;  %v3095_v1 = vmov 0   ;;  %vm3096_vm0 = vmmov 0   ;;  %v3202_v19 = vld [vmem:[%s3539_s0] sm:$0xff] }
  0x29   :  { %2623 = vmatprep.subr.bf16.mxu1 %v3094_v0  ;;  %255 = vmatprep.mubr.bf16.mxu0 %v3095_v1  ;;  %v3162_v2 = vld [vmem:[#allocation6 + $0x4] ss:$12 sps:$4 sm:$0xff]   ;;  %v3164_v3 = vld [vmem:[#allocation6] ss:$12 sps:$4 sm:$0xff]   ;;  %v3167_v4 = vld [vmem:[#allocation6 + $0x1c] ss:$12 sps:$4 sm:$0xff]  }
  0x2a   :  { %2639 = vmatprep.mubr.msk.bf16.mxu1 %vm3096_vm0, %v3094_v0  ;;  %2797 = vset.pattern.permute.xlu0 %v3095_v1  ;;  %v3170_v5 = vld [vmem:[#allocation6 + $0x18] ss:$12 sps:$4 sm:$0xff]   ;;  %v3173_v6 = vld [vmem:[#allocation6 + $0x34] ss:$12 sps:$4 sm:$0xff]   ;;  %v3176_v7 = vld [vmem:[#allocation6 + $0x30] ss:$12 sps:$4 sm:$0xff]  }
  0x2b   :  { %2798 = vset.pattern.permute.xlu1 %v3095_v1  ;;  %223 = vmatprep.subr.bf16.mxu0 %v3162_v2  ;;  %v3179_v8 = vld [vmem:[#allocation6 + $0x4c] ss:$12 sps:$4 sm:$0xff]   ;;  %v2819_v9 = vld [vmem:[#allocation6 + $0x8] ss:$12 sps:$4 sm:$0xff]   ;;  %v3185_v11 = vld [vmem:[#allocation6 + $0x64] ss:$12 sps:$4 sm:$0xff]  }
  0x2c   :  { %224 = vmatpush1.bf16.msra.mxu0 %v3164_v3  ;;  %v3182_v10 = vld [vmem:[#allocation6 + $0x48] ss:$12 sps:$4 sm:$0xff]   ;;  %2624 = vmatpush3.bf16.msra.mxu1 %v2819_v9  ;;  %v2823_v12 = vld [vmem:[#allocation6 + $0x20] ss:$12 sps:$4 sm:$0xff]   ;;  %v2825_v14 = vld [vmem:[#allocation6 + $0x38] ss:$12 sps:$4 sm:$0xff]  }
  0x2d   :  { %225 = vmatprep.subr.bf16.mxu0 %v3167_v4  ;;  %2625 = vmatprep.subr.bf16.mxu1 %v3094_v0  ;;  %v3188_v13 = vld [vmem:[#allocation6 + $0x60] ss:$12 sps:$4 sm:$0xff]   ;;  %v3192_v15 = vld [vmem:[#allocation6 + $0x7c] ss:$12 sps:$4 sm:$0xff]   ;;  %v3195_v16 = vld [vmem:[#allocation6 + $0x78] ss:$12 sps:$4 sm:$0xff]  }
  0x2e   :  { %v3197_v17 = vld [vmem:[#allocation6 + $0x94] ss:$12 sps:$4 sm:$0xff]   ;;  %v2826_v18 = vld [vmem:[#allocation6 + $0x50] ss:$12 sps:$4 sm:$0xff]   ;;  %vm333_vm1 = vcmp.gt.s32.totalorder %v3202_v19, 0  ;;  %vm612_vm2 = vcmp.gt.s32.totalorder %v3202_v19, 1 }
  0x2f   :  { %vm1452_vm3 = vcmp.gt.s32.totalorder %v3202_v19, 4  ;;  %vm2012_vm4 = vcmp.gt.s32.totalorder %v3202_v19, 6  ;;  %v334_v20 = vsel %vm333_vm1, 1, %v3095_v1  ;;  %v613_v21 = vsel %vm612_vm2, 1, %v3095_v1  ;;  %v3215_v24 = vld [vmem:[#allocation6 + $0x90] ss:$12 sps:$4 sm:$0xff]  }
  0x30   :  { %226 = vmatpush1.bf16.msra.mxu0 %v3170_v5  ;;  %2626 = vmatpush3.bf16.msra.mxu1 %v2823_v12  ;;  %v1453_v22 = vsel %vm1452_vm3, 1, %v3095_v1  ;;  %v2013_v23 = vsel %vm2012_vm4, 1, %v3095_v1  ;;  %v2827_v25 = vld [vmem:[#allocation6 + $0x68] ss:$12 sps:$4 sm:$0xff]   ;;  %v3217_v26 = vld [vmem:[#allocation6 + $0xac] ss:$12 sps:$4 sm:$0xff]  }
  0x31   :  { %227 = vmatprep.subr.bf16.mxu0 %v3173_v6  ;;  %2627 = vmatprep.subr.bf16.mxu1 %v3094_v0  ;;  %v3222_v27 = vld [vmem:[#allocation6 + $0xa8] ss:$12 sps:$4 sm:$0xff]   ;;  %v2828_v28 = vld [vmem:[#allocation6 + $0x80] ss:$12 sps:$4 sm:$0xff]   ;;  %v2829_v29 = vld [vmem:[#allocation6 + $0x98] ss:$12 sps:$4 sm:$0xff]  }
  0x32   :  { %336 = vperm.xlu0 %2797, %v334_v20   ;;  %v2830_v30 = vld [vmem:[#allocation6 + $0xb0] ss:$12 sps:$4 sm:$0xff]   ;;  %v3097_v31 = vmov 0.0|0.0   ;;  %v2831_v32 = vld [vmem:[#allocation6 + $0x8] ss:$12 sps:$4 sm:$0xff]   ;;  %v59_v40 = vld [vmem:[#allocation3] sm:$0xff] }
  0x33   :  { %v2832_v33 = vld [vmem:[#allocation6 + $0x20] ss:$12 sps:$4 sm:$0xff]   ;;  %v2833_v34 = vld [vmem:[#allocation6 + $0x38] ss:$12 sps:$4 sm:$0xff]   ;;  %v2834_v35 = vld [vmem:[#allocation6 + $0x50] ss:$12 sps:$4 sm:$0xff]  }
  0x34   :  { %228 = vmatpush1.bf16.msra.mxu0 %v3176_v7  ;;  %2628 = vmatpush3.bf16.msra.mxu1 %v2825_v14  ;;  %v2835_v36 = vld [vmem:[#allocation6 + $0x68] ss:$12 sps:$4 sm:$0xff]   ;;  %v2836_v37 = vld [vmem:[#allocation6 + $0x80] ss:$12 sps:$4 sm:$0xff]   ;;  %v2837_v38 = vld [vmem:[#allocation6 + $0x98] ss:$12 sps:$4 sm:$0xff]  }
  0x35   :  { %229 = vmatprep.subr.bf16.mxu0 %v3179_v8  ;;  %2629 = vmatprep.subr.bf16.mxu1 %v3094_v0  ;;  %v2838_v39 = vld [vmem:[#allocation6 + $0xb0] ss:$12 sps:$4 sm:$0xff]   ;;  %v60_v43 = vld [vmem:[#allocation3 + $0x8] sm:$0xff]  ;;  %vm892_vm7 = vcmp.gt.s32.totalorder %v3202_v19, 2  ;;  %vm1172_vm8 = vcmp.gt.s32.totalorder %v3202_v19, 3  ;;  %vm1732_vm9 = vcmp.gt.s32.totalorder %v3202_v19, 5 }
  0x36   :  { %615 = vperm.xlu0 %2797, %v613_v21   ;;  %v3262_v57 = vld [vmem:[%s3542_s3] ss:$0 sm:$0xff]  ;;  %vm2292_vm10 = vcmp.gt.s32.totalorder %v3202_v19, 7  ;;  %s3099_s25 = smov [#allocation9]  }
  0x37   :  { %v61_v61 = vld [vmem:[#allocation3 + $0x10] sm:$0xff]  ;;  %s2322_s26 = sshll.u32 %s3099_s25, 4  ;;  %s3508_s26 = int_to_ptr.vmem [resolvable:$true] %s2322_s26 }
  0x38   :  { %230 = vmatpush1.bf16.msra.mxu0 %v3182_v10  ;;  %2630 = vmatpush3.bf16.msra.mxu1 %v2826_v18 }
  0x39   :  { %231 = vmatprep.subr.bf16.mxu0 %v3185_v11  ;;  %2631 = vmatprep.subr.bf16.mxu1 %v3094_v0 }
  0x3a   :  { %1455 = vperm.xlu0 %2797, %v1453_v22  }
  0x3c   :  { %232 = vmatpush1.bf16.msra.mxu0 %v3188_v13  ;;  %2632 = vmatpush3.bf16.msra.mxu1 %v2827_v25 }
  0x3d   :  { %233 = vmatprep.subr.bf16.mxu0 %v3192_v15  ;;  %2633 = vmatprep.subr.bf16.mxu1 %v3094_v0 }
  0x3e   :  { %2015 = vperm.xlu0 %2797, %v2013_v23  }
  0x40   :  { %234 = vmatpush1.bf16.msra.mxu0 %v3195_v16  ;;  %2634 = vmatpush3.bf16.msra.mxu1 %v2828_v28  ;;  %v2839_v28 = vld [vmem:[#allocation6 + $0x8] ss:$12 sps:$4 sm:$0xff]  }
  0x41   :  { %235 = vmatprep.subr.bf16.mxu0 %v3197_v17  ;;  %2635 = vmatprep.subr.bf16.mxu1 %v3094_v0 }
  0x44   :  { %236 = vmatpush1.bf16.msra.mxu0 %v3215_v24  ;;  %2636 = vmatpush3.bf16.msra.mxu1 %v2829_v29  ;;  %v2840_v29 = vld [vmem:[#allocation6 + $0x20] ss:$12 sps:$4 sm:$0xff]  }
  0x45   :  { %237 = vmatprep.subr.bf16.mxu0 %v3217_v26  ;;  %2637 = vmatprep.subr.bf16.mxu1 %v3094_v0 }
  0x48   :  { %238 = vmatpush1.bf16.msra.mxu0 %v3222_v27  ;;  %2638 = vmatpush3.bf16.msra.mxu1 %v2830_v30  ;;  %v2841_v30 = vld [vmem:[#allocation6 + $0x38] ss:$12 sps:$4 sm:$0xff]  }
  0x49   :  { %507 = vmatprep.subr.bf16.mxu0 %v3162_v2  ;;  %2643 = vmatprep.subr.bf16.mxu1 %v3094_v0 }
  0x4b   :  { %256 = vmatmul.mubr.bf16.vlgmr.msra.gmra.mrb[0].mxu0 %v3097_v31  ;;  %2640 = vmatmul.mubr.bf16.vlgmr.msra.gmra.mrb[0].mxu1 %v3097_v31  ;;  %v2842_v31 = vld [vmem:[#allocation6 + $0x50] ss:$12 sps:$4 sm:$0xff]  }
  0x4c   :  { %508 = vmatpush1.bf16.msra.mxu0 %v3164_v3  ;;  %539 = vmatprep.mubr.bf16.mxu0 %v3095_v1 }
  0x4d   :  { %509 = vmatprep.subr.bf16.mxu0 %v3167_v4  ;;  %2659 = vmatprep.mubr.msk.bf16.mxu1 %vm3096_vm0, %v3094_v0 }
  0x4e   :  { %2644 = vmatpush3.bf16.msra.mxu1 %v2831_v32  ;;  %v2843_v32 = vld [vmem:[#allocation6 + $0x68] ss:$12 sps:$4 sm:$0xff]  }
  0x4f   :  { %2645 = vmatprep.subr.bf16.mxu1 %v3094_v0 }
  0x50   :  { %510 = vmatpush1.bf16.msra.mxu0 %v3170_v5 }
  0x51   :  { %511 = vmatprep.subr.bf16.mxu0 %v3173_v6 }
  0x52   :  { %2646 = vmatpush3.bf16.msra.mxu1 %v2832_v33  ;;  %v2844_v33 = vld [vmem:[#allocation6 + $0x80] ss:$12 sps:$4 sm:$0xff]  }
  0x53   :  { %2647 = vmatprep.subr.bf16.mxu1 %v3094_v0 }
  0x54   :  { %512 = vmatpush1.bf16.msra.mxu0 %v3176_v7 }
  0x55   :  { %513 = vmatprep.subr.bf16.mxu0 %v3179_v8 }
  0x56   :  { %2648 = vmatpush3.bf16.msra.mxu1 %v2833_v34  ;;  %v2846_v34 = vld [vmem:[#allocation6 + $0xb0] ss:$12 sps:$4 sm:$0xff]  }
  0x57   :  { %2649 = vmatprep.subr.bf16.mxu1 %v3094_v0 }
  0x58   :  { %514 = vmatpush1.bf16.msra.mxu0 %v3182_v10 }
  0x59   :  { %515 = vmatprep.subr.bf16.mxu0 %v3185_v11 }
  0x5a   :  { %2650 = vmatpush3.bf16.msra.mxu1 %v2834_v35  ;;  %v893_v35 = vsel %vm892_vm7, 1, %v3095_v1 }
  0x5b   :  { %2651 = vmatprep.subr.bf16.mxu1 %v3094_v0  ;;  %895 = vperm.xlu1 %2798, %v893_v35  }
  0x5c   :  { %516 = vmatpush1.bf16.msra.mxu0 %v3188_v13 }
  0x5d   :  { %517 = vmatprep.subr.bf16.mxu0 %v3192_v15 }
  0x5e   :  { %2652 = vmatpush3.bf16.msra.mxu1 %v2835_v36  ;;  %v1173_v36 = vsel %vm1172_vm8, 1, %v3095_v1 }
  0x5f   :  { %2653 = vmatprep.subr.bf16.mxu1 %v3094_v0  ;;  %1175 = vperm.xlu1 %2798, %v1173_v36  }
  0x60   :  { %518 = vmatpush1.bf16.msra.mxu0 %v3195_v16 }
  0x61   :  { %519 = vmatprep.subr.bf16.mxu0 %v3197_v17 }
  0x62   :  { %2654 = vmatpush3.bf16.msra.mxu1 %v2836_v37  ;;  %v1733_v37 = vsel %vm1732_vm9, 1, %v3095_v1 }
  0x63   :  { %2655 = vmatprep.subr.bf16.mxu1 %v3094_v0  ;;  %1735 = vperm.xlu1 %2798, %v1733_v37  }
  0x64   :  { %520 = vmatpush1.bf16.msra.mxu0 %v3215_v24 }
  0x65   :  { %521 = vmatprep.subr.bf16.mxu0 %v3217_v26 }
  0x66   :  { %2656 = vmatpush3.bf16.msra.mxu1 %v2837_v38  ;;  %v2293_v38 = vsel %vm2292_vm10, 1, %v3095_v1 }
  0x67   :  { %2657 = vmatprep.subr.bf16.mxu1 %v3094_v0  ;;  %2295 = vperm.xlu1 %2798, %v2293_v38  }
  0x68   :  { %522 = vmatpush1.bf16.msra.mxu0 %v3222_v27 }
  0x69   :  { %787 = vmatprep.subr.bf16.mxu0 %v3162_v2 }
  0x6a   :  { %2658 = vmatpush3.bf16.msra.mxu1 %v2838_v39  ;;  %v343_v39 = vld [vmem:[#allocation3 + $0x18] sm:$0xff] }
  0x6b   :  { %2663 = vmatprep.subr.bf16.mxu1 %v3094_v0 }
  0xb1   :  { %v337_v18 = vpop.permute.xlu0 %336 }
  0xb2   :  { %vm338_vm5 = vcmp.eq.s32.totalorder %v337_v18, 1 }
  0xb3   :  { %vm2545_vm6 = vmpackc.low %vm338_vm5, %vm338_vm5 }
  0xb5   :  { %v616_v18 = vpop.permute.xlu0 %615 }
  0xb6   :  { %vm617_vm11 = vcmp.eq.s32.totalorder %v616_v18, 1  ;;  %v3378_v18 = vld [vmem:[#allocation6 + $0x7c] ss:$12 sps:$4 sm:$0xff]  }
 0x11e   :  { %v257_v41 = vpop.f32.mrb[0].mxu0  ;;  %v298_v50 = vpop.f32.mrb[0].mxu1 }
 0x11f   :  { %v304_v42 = vadd.f32 %v257_v41, %v59_v40  ;;  %v259_v44 = vpop.f32.mrb[1].mxu0  ;;  %v2641_v51 = vpop.f32.mrb[1].mxu1  ;;  %v324_v59 = vadd.f32 %v3262_v57, %v298_v50 }
 0x120   :  { %v261_v45 = vpop.f32.mrb[2].mxu0  ;;  %v311_v48 = vadd.f32 %v259_v44, %v60_v43  ;;  %v301_v52 = vpop.f32.mrb[2].mxu1  ;;  %v344_v43 = vld [vmem:[#allocation3 + $0x20] sm:$0xff] }
 0x121   :  { %v2360_v46 = vmul.f32 -1.442695, %v304_v42  ;;  %v262_v47 = vpop.f32.mrb[3].mxu0  ;;  %v2642_v53 = vpop.f32.mrb[3].mxu1 }
 0x122   :  { %v2361_v49 = vmul.f32 -1.442695, %v311_v48 }
 0x123   :  { %2911 = vpow2.f32 %v2360_v46 }
 0x124   :  { %2913 = vpow2.f32 %v2361_v49 }
 0x12d   :  { %v2912_v54 = vpop.eup %2911 }
 0x12e   :  { %v308_v55 = vadd.f32 1.0, %v2912_v54  ;;  %v2914_v56 = vpop.eup %2913 }
 0x12f   :  { %v315_v58 = vadd.f32 1.0, %v2914_v56 }
 0x130   :  { %2915 = vrcp.f32 %v308_v55 }
 0x131   :  { %2917 = vrcp.f32 %v315_v58 }
 0x13a   :  { %v2916_v60 = vpop.eup %2915 }
 0x13b   :  { %v325_v62 = vmul.f32 %v2916_v60, %v324_v59  ;;  %v2918_v9 = vpop.eup %2917  ;;  %v345_v59 = vld [vmem:[#allocation3 + $0x28] sm:$0xff] }
 0x13c   :  { %v328_v12 = vsub.f32 1.0, %v2918_v9  ;;  %v330_v21 = vmul.f32 0.0, %v2918_v9 }
 0x13d   :  { %v326_v63 = vadd.f32 %v325_v62, %v61_v61 }
 0x13f   :  { %2919 = vtanh.f32 %v326_v63 }
 0x149   :  { %v2920_v14 = vpop.eup %2919 }
 0x14a   :  { %v329_v20 = vmul.f32 %v2920_v14, %v328_v12 }
 0x14c   :  { %v331_v22 = vadd.f32 %v330_v21, %v329_v20 }
 0x14e   :  { %v2546_v23 = vpack.c.bf16 %v331_v22, %v331_v22  ;;  %v3265_v25 = vsel %vm338_vm5, %v331_v22, 0.0 }
 0x14f   :  { %340 = vst [vmem:[#allocation8] sm:$0xff] %v3265_v25 }
 0x150   :  { %2547 = vmatmul.mubr.msk.bf16.vlgmr.msra.gmra.mrb[4].mxu0 %vm2545_vm6, %v2546_v23  ;;  %2660 = vmatmul.mubr.msk.bf16.vlgmr.msra.gmra.mrb[4].mxu1 %vm2545_vm6, %v2546_v23 }
 0x151   :  { %788 = vmatpush1.bf16.msra.mxu0 %v3164_v3  ;;  %819 = vmatprep.mubr.bf16.mxu0 %v3095_v1 }
 0x152   :  { %789 = vmatprep.subr.bf16.mxu0 %v3167_v4  ;;  %2679 = vmatprep.mubr.msk.bf16.mxu1 %vm3096_vm0, %v3094_v0 }
 0x153   :  { %2664 = vmatpush3.bf16.msra.mxu1 %v2839_v28 }
 0x154   :  { %2665 = vmatprep.subr.bf16.mxu1 %v3094_v0 }
 0x155   :  { %790 = vmatpush1.bf16.msra.mxu0 %v3170_v5 }
 0x156   :  { %791 = vmatprep.subr.bf16.mxu0 %v3173_v6 }
 0x157   :  { %2666 = vmatpush3.bf16.msra.mxu1 %v2840_v29 }
 0x158   :  { %2667 = vmatprep.subr.bf16.mxu1 %v3094_v0 }
 0x159   :  { %792 = vmatpush1.bf16.msra.mxu0 %v3176_v7 }
 0x15a   :  { %793 = vmatprep.subr.bf16.mxu0 %v3179_v8 }
 0x15b   :  { %2668 = vmatpush3.bf16.msra.mxu1 %v2841_v30 }
 0x15c   :  { %2669 = vmatprep.subr.bf16.mxu1 %v3094_v0 }
 0x15d   :  { %794 = vmatpush1.bf16.msra.mxu0 %v3182_v10 }
 0x15e   :  { %795 = vmatprep.subr.bf16.mxu0 %v3185_v11 }
 0x15f   :  { %2670 = vmatpush3.bf16.msra.mxu1 %v2842_v31 }
 0x160   :  { %2671 = vmatprep.subr.bf16.mxu1 %v3094_v0 }
 0x161   :  { %796 = vmatpush1.bf16.msra.mxu0 %v3188_v13 }
 0x162   :  { %797 = vmatprep.subr.bf16.mxu0 %v3192_v15 }
 0x163   :  { %2672 = vmatpush3.bf16.msra.mxu1 %v2843_v32 }
 0x164   :  { %2673 = vmatprep.subr.bf16.mxu1 %v3094_v0 }
 0x165   :  { %798 = vmatpush1.bf16.msra.mxu0 %v3195_v16 }
 0x166   :  { %799 = vmatprep.subr.bf16.mxu0 %v3197_v17 }
 0x167   :  { %2674 = vmatpush3.bf16.msra.mxu1 %v2844_v33 }
 0x168   :  { %2675 = vmatprep.subr.bf16.mxu1 %v3094_v0 }
 0x169   :  { %800 = vmatpush1.bf16.msra.mxu0 %v3215_v24 }
 0x16a   :  { %801 = vmatprep.subr.bf16.mxu0 %v3217_v26 }
 0x16d   :  { %802 = vmatpush1.bf16.msra.mxu0 %v3222_v27 }
 0x16e   :  { %1067 = vmatprep.subr.bf16.mxu0 %v3162_v2  ;;  %v2845_v2 = vld [vmem:[#allocation6 + $0x98] ss:$12 sps:$4 sm:$0xff]  }
 0x16f   :  { %2676 = vmatpush3.bf16.msra.mxu1 %v2845_v2 }
 0x170   :  { %2677 = vmatprep.subr.bf16.mxu1 %v3094_v0 }
 0x173   :  { %2678 = vmatpush3.bf16.msra.mxu1 %v2846_v34 }
 0x174   :  { %2683 = vmatprep.subr.bf16.mxu1 %v3094_v0 }
 0x223   :  { %v541_v40 = vpop.f32.mrb[4].mxu0  ;;  %v582_v41 = vpop.f32.mrb[4].mxu1 }
 0x224   :  { %v588_v42 = vadd.f32 %v541_v40, %v343_v39  ;;  %v543_v44 = vpop.f32.mrb[5].mxu0  ;;  %v2661_v45 = vpop.f32.mrb[5].mxu1  ;;  %v602_v56 = vadd.f32 %v3262_v57, %v582_v41  ;;  %v625_v39 = vld [vmem:[#allocation3 + $0x40] sm:$0xff] }
 0x225   :  { %v545_v46 = vpop.f32.mrb[6].mxu0  ;;  %v585_v47 = vpop.f32.mrb[6].mxu1  ;;  %v595_v51 = vadd.f32 %v543_v44, %v344_v43 }
 0x226   :  { %v2387_v48 = vmul.f32 -1.442695, %v588_v42  ;;  %v546_v49 = vpop.f32.mrb[7].mxu0  ;;  %v2662_v50 = vpop.f32.mrb[7].mxu1 }
 0x227   :  { %v2388_v52 = vmul.f32 -1.442695, %v595_v51  ;;  %v896_v45 = vpop.permute.xlu1 %895 }
 0x228   :  { %2921 = vpow2.f32 %v2387_v48  ;;  %vm897_vm12 = vcmp.eq.s32.totalorder %v896_v45, 1 }
 0x229   :  { %2923 = vpow2.f32 %v2388_v52  ;;  %v3346_v52 = vld [vmem:[#allocation6 + $0x4] ss:$12 sps:$4 sm:$0xff]  }
 0x232   :  { %v2922_v19 = vpop.eup %2921 }
 0x233   :  { %v592_v53 = vadd.f32 1.0, %v2922_v19  ;;  %v2924_v54 = vpop.eup %2923  ;;  %v3348_v19 = vld [vmem:[#allocation6] ss:$12 sps:$4 sm:$0xff]  }
 0x234   :  { %v599_v55 = vadd.f32 1.0, %v2924_v54  ;;  %v3352_v54 = vld [vmem:[#allocation6 + $0x1c] ss:$12 sps:$4 sm:$0xff]  }
 0x235   :  { %2925 = vrcp.f32 %v592_v53  ;;  %v2858_v53 = vld [vmem:[#allocation6 + $0x8] ss:$12 sps:$4 sm:$0xff]  }
 0x236   :  { %2927 = vrcp.f32 %v599_v55  ;;  %v3355_v55 = vld [vmem:[#allocation6 + $0x18] ss:$12 sps:$4 sm:$0xff]  }
 0x23f   :  { %v2926_v58 = vpop.eup %2925 }
 0x240   :  { %v603_v60 = vmul.f32 %v2926_v58, %v602_v56  ;;  %v2928_v62 = vpop.eup %2927  ;;  %v2862_v56 = vld [vmem:[#allocation6 + $0x20] ss:$12 sps:$4 sm:$0xff]  }
 0x241   :  { %v606_v63 = vsub.f32 1.0, %v2928_v62  ;;  %v608_v12 = vmul.f32 %v2928_v62, %v3265_v25  ;;  %v3359_v58 = vld [vmem:[#allocation6 + $0x34] ss:$12 sps:$4 sm:$0xff]  }
 0x242   :  { %v604_v61 = vadd.f32 %v603_v60, %v345_v59  ;;  %v3362_v59 = vld [vmem:[#allocation6 + $0x30] ss:$12 sps:$4 sm:$0xff]   ;;  %v2866_v60 = vld [vmem:[#allocation6 + $0x38] ss:$12 sps:$4 sm:$0xff]   ;;  %v3369_v62 = vld [vmem:[#allocation6 + $0x48] ss:$12 sps:$4 sm:$0xff]  }
 0x244   :  { %2929 = vtanh.f32 %v604_v61  ;;  %v3366_v61 = vld [vmem:[#allocation6 + $0x4c] ss:$12 sps:$4 sm:$0xff]  }
 0x24e   :  { %v2930_v9 = vpop.eup %2929 }
 0x24f   :  { %v607_v14 = vmul.f32 %v2930_v9, %v606_v63  ;;  %v2870_v63 = vld [vmem:[#allocation6 + $0x50] ss:$12 sps:$4 sm:$0xff]   ;;  %v3373_v9 = vld [vmem:[#allocation6 + $0x60] ss:$12 sps:$4 sm:$0xff]  }
 0x251   :  { %v609_v20 = vadd.f32 %v608_v12, %v607_v14  ;;  %v3375_v12 = vld [vmem:[#allocation6 + $0x64] ss:$12 sps:$4 sm:$0xff]   ;;  %v2874_v14 = vld [vmem:[#allocation6 + $0x68] ss:$12 sps:$4 sm:$0xff]  }
 0x253   :  { %v618_v21 = vsel %vm617_vm11, %v609_v20, 0.0  ;;  %v3306_v22 = vsel %vm617_vm11, %v609_v20, %v3265_v25  ;;  %v3382_v20 = vld [vmem:[#allocation6 + $0x78] ss:$12 sps:$4 sm:$0xff]  }
 0x254   :  { %620 = vst [vmem:[#allocation8 + $0x8] sm:$0xff] %v618_v21  ;;  %v626_v23 = vpack.c.bf16 %v3306_v22, %v3306_v22  ;;  %v2878_v21 = vld [vmem:[#allocation6 + $0x80] ss:$12 sps:$4 sm:$0xff]  }
 0x256   :  { %820 = vmatmul.mubr.bf16.vlgmr.msra.gmra.mrb[8].mxu0 %v626_v23  ;;  %2680 = vmatmul.mubr.bf16.vlgmr.msra.gmra.mrb[8].mxu1 %v626_v23  ;;  %v3389_v23 = vld [vmem:[#allocation6 + $0x90] ss:$12 sps:$4 sm:$0xff]  }
 0x257   :  { %1068 = vmatpush1.bf16.msra.mxu0 %v3164_v3  ;;  %1099 = vmatprep.mubr.bf16.mxu0 %v3095_v1  ;;  %v2847_v3 = vld [vmem:[#allocation6 + $0x8] ss:$12 sps:$4 sm:$0xff]  }
 0x258   :  { %1069 = vmatprep.subr.bf16.mxu0 %v3167_v4  ;;  %2699 = vmatprep.mubr.msk.bf16.mxu1 %vm3096_vm0, %v3094_v0  ;;  %v2848_v4 = vld [vmem:[#allocation6 + $0x20] ss:$12 sps:$4 sm:$0xff]  }
 0x259   :  { %2684 = vmatpush3.bf16.msra.mxu1 %v2847_v3  ;;  %v2882_v3 = vld [vmem:[#allocation6 + $0x98] ss:$12 sps:$4 sm:$0xff]  }
 0x25a   :  { %2685 = vmatprep.subr.bf16.mxu1 %v3094_v0 }
 0x25b   :  { %1070 = vmatpush1.bf16.msra.mxu0 %v3170_v5  ;;  %v2849_v5 = vld [vmem:[#allocation6 + $0x38] ss:$12 sps:$4 sm:$0xff]  }
 0x25c   :  { %1071 = vmatprep.subr.bf16.mxu0 %v3173_v6  ;;  %v2850_v6 = vld [vmem:[#allocation6 + $0x50] ss:$12 sps:$4 sm:$0xff]  }
 0x25d   :  { %2686 = vmatpush3.bf16.msra.mxu1 %v2848_v4  ;;  %v3393_v4 = vld [vmem:[#allocation6 + $0xac] ss:$12 sps:$4 sm:$0xff]  }
 0x25e   :  { %2687 = vmatprep.subr.bf16.mxu1 %v3094_v0 }
 0x25f   :  { %1072 = vmatpush1.bf16.msra.mxu0 %v3176_v7  ;;  %v2851_v7 = vld [vmem:[#allocation6 + $0x68] ss:$12 sps:$4 sm:$0xff]  }
 0x260   :  { %1073 = vmatprep.subr.bf16.mxu0 %v3179_v8  ;;  %v2852_v8 = vld [vmem:[#allocation6 + $0x80] ss:$12 sps:$4 sm:$0xff]  }
 0x261   :  { %2688 = vmatpush3.bf16.msra.mxu1 %v2849_v5  ;;  %v3396_v5 = vld [vmem:[#allocation6 + $0xa8] ss:$12 sps:$4 sm:$0xff]  }
 0x262   :  { %2689 = vmatprep.subr.bf16.mxu1 %v3094_v0 }
 0x263   :  { %1074 = vmatpush1.bf16.msra.mxu0 %v3182_v10  ;;  %v2853_v10 = vld [vmem:[#allocation6 + $0x98] ss:$12 sps:$4 sm:$0xff]  }
 0x264   :  { %1075 = vmatprep.subr.bf16.mxu0 %v3185_v11  ;;  %v2854_v11 = vld [vmem:[#allocation6 + $0xb0] ss:$12 sps:$4 sm:$0xff]  }
 0x265   :  { %2690 = vmatpush3.bf16.msra.mxu1 %v2850_v6  ;;  %v2886_v6 = vld [vmem:[#allocation6 + $0xb0] ss:$12 sps:$4 sm:$0xff]  }
 0x266   :  { %2691 = vmatprep.subr.bf16.mxu1 %v3094_v0 }
 0x267   :  { %1076 = vmatpush1.bf16.msra.mxu0 %v3188_v13  ;;  %v623_v13 = vld [vmem:[#allocation3 + $0x30] sm:$0xff] }
 0x268   :  { %1077 = vmatprep.subr.bf16.mxu0 %v3192_v15 }
 0x269   :  { %2692 = vmatpush3.bf16.msra.mxu1 %v2851_v7  ;;  %v903_v7 = vld [vmem:[#allocation3 + $0x48] sm:$0xff] }
 0x26a   :  { %2693 = vmatprep.subr.bf16.mxu1 %v3094_v0 }
 0x26b   :  { %1078 = vmatpush1.bf16.msra.mxu0 %v3195_v16 }
 0x26c   :  { %1079 = vmatprep.subr.bf16.mxu0 %v3197_v17 }
 0x26d   :  { %2694 = vmatpush3.bf16.msra.mxu1 %v2852_v8 }
 0x26e   :  { %2695 = vmatprep.subr.bf16.mxu1 %v3094_v0 }
 0x26f   :  { %1080 = vmatpush1.bf16.msra.mxu0 %v3215_v24  ;;  %v624_v24 = vld [vmem:[#allocation3 + $0x38] sm:$0xff] }
 0x270   :  { %1081 = vmatprep.subr.bf16.mxu0 %v3217_v26 }
 0x271   :  { %2696 = vmatpush3.bf16.msra.mxu1 %v2853_v10 }
 0x272   :  { %2697 = vmatprep.subr.bf16.mxu1 %v3094_v0 }
 0x273   :  { %1082 = vmatpush1.bf16.msra.mxu0 %v3222_v27 }
 0x274   :  { %1347 = vmatprep.subr.bf16.mxu0 %v3346_v52 }
 0x275   :  { %2698 = vmatpush3.bf16.msra.mxu1 %v2854_v11 }
 0x276   :  { %2703 = vmatprep.subr.bf16.mxu1 %v3094_v0 }
 0x329   :  { %v821_v15 = vpop.f32.mrb[8].mxu0  ;;  %v862_v16 = vpop.f32.mrb[8].mxu1 }
 0x32a   :  { %v868_v17 = vadd.f32 %v821_v15, %v623_v13  ;;  %v823_v26 = vpop.f32.mrb[9].mxu0  ;;  %v2681_v27 = vpop.f32.mrb[9].mxu1  ;;  %v882_v37 = vadd.f32 %v3262_v57, %v862_v16  ;;  %v904_v13 = vld [vmem:[#allocation3 + $0x50] sm:$0xff] }
 0x32b   :  { %v825_v25 = vpop.f32.mrb[10].mxu0  ;;  %v865_v28 = vpop.f32.mrb[10].mxu1  ;;  %v875_v32 = vadd.f32 %v823_v26, %v624_v24 }
 0x32c   :  { %v2413_v29 = vmul.f32 -1.442695, %v868_v17  ;;  %v826_v30 = vpop.f32.mrb[11].mxu0  ;;  %v2682_v31 = vpop.f32.mrb[11].mxu1 }
 0x32d   :  { %v2414_v33 = vmul.f32 -1.442695, %v875_v32 }
 0x32e   :  { %2931 = vpow2.f32 %v2413_v29 }
 0x32f   :  { %2933 = vpow2.f32 %v2414_v33 }
 0x338   :  { %v2932_v2 = vpop.eup %2931 }
 0x339   :  { %v872_v34 = vadd.f32 1.0, %v2932_v2  ;;  %v2934_v35 = vpop.eup %2933 }
 0x33a   :  { %v879_v36 = vadd.f32 1.0, %v2934_v35  ;;  %v905_v35 = vld [vmem:[#allocation3 + $0x58] sm:$0xff] }
 0x33b   :  { %2935 = vrcp.f32 %v872_v34 }
 0x33c   :  { %2937 = vrcp.f32 %v879_v36 }
 0x345   :  { %v2936_v38 = vpop.eup %2935 }
 0x346   :  { %v883_v40 = vmul.f32 %v2936_v38, %v882_v37  ;;  %v2938_v42 = vpop.eup %2937 }
 0x347   :  { %v886_v43 = vsub.f32 1.0, %v2938_v42  ;;  %v888_v47 = vmul.f32 %v2938_v42, %v3306_v22 }
 0x348   :  { %v884_v41 = vadd.f32 %v883_v40, %v625_v39 }
 0x34a   :  { %2939 = vtanh.f32 %v884_v41 }
 0x354   :  { %v2940_v44 = vpop.eup %2939 }
 0x355   :  { %v887_v46 = vmul.f32 %v2940_v44, %v886_v43  ;;  %v1176_v43 = vpop.permute.xlu1 %1175 }
 0x356   :  { %vm1177_vm13 = vcmp.eq.s32.totalorder %v1176_v43, 1 }
 0x357   :  { %v889_v48 = vadd.f32 %v888_v47, %v887_v46 }
 0x359   :  { %v898_v49 = vsel %vm897_vm12, %v889_v48, 0.0  ;;  %v3339_v50 = vsel %vm897_vm12, %v889_v48, %v3306_v22  ;;  %v3386_v22 = vld [vmem:[#allocation6 + $0x94] ss:$12 sps:$4 sm:$0xff]  }
 0x35a   :  { %900 = vst [vmem:[#allocation8 + $0x10] sm:$0xff] %v898_v49  ;;  %v906_v51 = vpack.c.bf16 %v3339_v50, %v3339_v50  ;;  %v2887_v48 = vld [vmem:[#allocation6 + $0x8] ss:$12 sps:$4 sm:$0xff]   ;;  %v2888_v49 = vld [vmem:[#allocation6 + $0x20] ss:$12 sps:$4 sm:$0xff]  }
 0x35c   :  { %1100 = vmatmul.mubr.bf16.vlgmr.msra.gmra.mrb[12].mxu0 %v906_v51  ;;  %2700 = vmatmul.mubr.bf16.vlgmr.msra.gmra.mrb[12].mxu1 %v906_v51  ;;  %v2890_v51 = vld [vmem:[#allocation6 + $0x50] ss:$12 sps:$4 sm:$0xff]  }
 0x35d   :  { %1379 = vmatprep.mubr.bf16.mxu0 %v3095_v1  ;;  %2719 = vmatprep.mubr.msk.bf16.mxu1 %vm3096_vm0, %v3094_v0 }
 0x35e   :  { %1348 = vmatpush1.bf16.msra.mxu0 %v3348_v19  ;;  %2704 = vmatpush3.bf16.msra.mxu1 %v2858_v53  ;;  %v2891_v53 = vld [vmem:[#allocation6 + $0x68] ss:$12 sps:$4 sm:$0xff]  }
 0x35f   :  { %2705 = vmatprep.subr.bf16.mxu1 %v3094_v0  ;;  %1349 = vmatprep.subr.bf16.mxu0 %v3352_v54 }
 0x362   :  { %1350 = vmatpush1.bf16.msra.mxu0 %v3355_v55  ;;  %2706 = vmatpush3.bf16.msra.mxu1 %v2862_v56  ;;  %v2892_v56 = vld [vmem:[#allocation6 + $0x80] ss:$12 sps:$4 sm:$0xff]  }
 0x363   :  { %2707 = vmatprep.subr.bf16.mxu1 %v3094_v0  ;;  %1351 = vmatprep.subr.bf16.mxu0 %v3359_v58 }
 0x366   :  { %1352 = vmatpush1.bf16.msra.mxu0 %v3362_v59  ;;  %2708 = vmatpush3.bf16.msra.mxu1 %v2866_v60  ;;  %v2893_v60 = vld [vmem:[#allocation6 + $0x98] ss:$12 sps:$4 sm:$0xff]  }
 0x367   :  { %2709 = vmatprep.subr.bf16.mxu1 %v3094_v0  ;;  %1353 = vmatprep.subr.bf16.mxu0 %v3366_v61 }
 0x36a   :  { %1354 = vmatpush1.bf16.msra.mxu0 %v3369_v62  ;;  %2710 = vmatpush3.bf16.msra.mxu1 %v2870_v63  ;;  %v2894_v63 = vld [vmem:[#allocation6 + $0xb0] ss:$12 sps:$4 sm:$0xff]  }
 0x36b   :  { %2711 = vmatprep.subr.bf16.mxu1 %v3094_v0  ;;  %1355 = vmatprep.subr.bf16.mxu0 %v3375_v12 }
 0x36e   :  { %1356 = vmatpush1.bf16.msra.mxu0 %v3373_v9  ;;  %2712 = vmatpush3.bf16.msra.mxu1 %v2874_v14  ;;  %v1183_v14 = vld [vmem:[#allocation3 + $0x60] sm:$0xff] }
 0x36f   :  { %1357 = vmatprep.subr.bf16.mxu0 %v3378_v18  ;;  %2713 = vmatprep.subr.bf16.mxu1 %v3094_v0 }
 0x372   :  { %1358 = vmatpush1.bf16.msra.mxu0 %v3382_v20  ;;  %2714 = vmatpush3.bf16.msra.mxu1 %v2878_v21 }
 0x373   :  { %1359 = vmatprep.subr.bf16.mxu0 %v3386_v22  ;;  %2715 = vmatprep.subr.bf16.mxu1 %v3094_v0 }
 0x376   :  { %1360 = vmatpush1.bf16.msra.mxu0 %v3389_v23  ;;  %2716 = vmatpush3.bf16.msra.mxu1 %v2882_v3 }
 0x377   :  { %1361 = vmatprep.subr.bf16.mxu0 %v3393_v4  ;;  %2717 = vmatprep.subr.bf16.mxu1 %v3094_v0 }
 0x37a   :  { %1362 = vmatpush1.bf16.msra.mxu0 %v3396_v5  ;;  %2718 = vmatpush3.bf16.msra.mxu1 %v2886_v6 }
 0x37b   :  { %1627 = vmatprep.subr.bf16.mxu0 %v3346_v52  ;;  %2723 = vmatprep.subr.bf16.mxu1 %v3094_v0 }
 0x42f   :  { %v1101_v8 = vpop.f32.mrb[12].mxu0  ;;  %v1142_v10 = vpop.f32.mrb[12].mxu1 }
 0x430   :  { %v1148_v11 = vadd.f32 %v1101_v8, %v903_v7  ;;  %v1103_v15 = vpop.f32.mrb[13].mxu0  ;;  %v2701_v16 = vpop.f32.mrb[13].mxu1  ;;  %v1162_v2 = vadd.f32 %v3262_v57, %v1142_v10  ;;  %v1184_v7 = vld [vmem:[#allocation3 + $0x68] sm:$0xff] }
 0x431   :  { %v1105_v17 = vpop.f32.mrb[14].mxu0  ;;  %v1145_v24 = vpop.f32.mrb[14].mxu1  ;;  %v1155_v28 = vadd.f32 %v1103_v15, %v904_v13 }
 0x432   :  { %v2439_v26 = vmul.f32 -1.442695, %v1148_v11  ;;  %v1106_v27 = vpop.f32.mrb[15].mxu0  ;;  %v2702_v25 = vpop.f32.mrb[15].mxu1 }
 0x433   :  { %v2440_v29 = vmul.f32 -1.442695, %v1155_v28 }
 0x434   :  { %2941 = vpow2.f32 %v2439_v26 }
 0x435   :  { %2943 = vpow2.f32 %v2440_v29 }
 0x43e   :  { %v2942_v30 = vpop.eup %2941 }
 0x43f   :  { %v1152_v31 = vadd.f32 1.0, %v2942_v30  ;;  %v2944_v32 = vpop.eup %2943 }
 0x440   :  { %v1159_v33 = vadd.f32 1.0, %v2944_v32  ;;  %v1185_v32 = vld [vmem:[#allocation3 + $0x70] sm:$0xff] }
 0x441   :  { %2945 = vrcp.f32 %v1152_v31 }
 0x442   :  { %2947 = vrcp.f32 %v1159_v33 }
 0x44b   :  { %v2946_v34 = vpop.eup %2945 }
 0x44c   :  { %v1163_v36 = vmul.f32 %v2946_v34, %v1162_v2  ;;  %v2948_v38 = vpop.eup %2947 }
 0x44d   :  { %v1166_v39 = vsub.f32 1.0, %v2948_v38  ;;  %v1168_v41 = vmul.f32 %v2948_v38, %v3339_v50 }
 0x44e   :  { %v1164_v37 = vadd.f32 %v1163_v36, %v905_v35 }
 0x450   :  { %2949 = vtanh.f32 %v1164_v37 }
 0x45a   :  { %v2950_v40 = vpop.eup %2949 }
 0x45b   :  { %v1167_v42 = vmul.f32 %v2950_v40, %v1166_v39  ;;  %v1456_v39 = vpop.permute.xlu0 %1455 }
 0x45c   :  { %vm1457_vm14 = vcmp.eq.s32.totalorder %v1456_v39, 1 }
 0x45d   :  { %v1169_v44 = vadd.f32 %v1168_v41, %v1167_v42 }
 0x45f   :  { %v1178_v45 = vsel %vm1177_vm13, %v1169_v44, 0.0  ;;  %v3406_v46 = vsel %vm1177_vm13, %v1169_v44, %v3339_v50  ;;  %v2889_v50 = vld [vmem:[#allocation6 + $0x38] ss:$12 sps:$4 sm:$0xff]   ;;  %v2895_v44 = vld [vmem:[#allocation6 + $0x8] ss:$12 sps:$4 sm:$0xff]  }
 0x460   :  { %1180 = vst [vmem:[#allocation8 + $0x18] sm:$0xff] %v1178_v45  ;;  %v1186_v47 = vpack.c.bf16 %v3406_v46, %v3406_v46  ;;  %v2896_v45 = vld [vmem:[#allocation6 + $0x20] ss:$12 sps:$4 sm:$0xff]  }
 0x462   :  { %1380 = vmatmul.mubr.bf16.vlgmr.msra.gmra.mrb[16].mxu0 %v1186_v47  ;;  %2720 = vmatmul.mubr.bf16.vlgmr.msra.gmra.mrb[16].mxu1 %v1186_v47  ;;  %v2898_v47 = vld [vmem:[#allocation6 + $0x50] ss:$12 sps:$4 sm:$0xff]  }
 0x463   :  { %1628 = vmatpush1.bf16.msra.mxu0 %v3348_v19  ;;  %1659 = vmatprep.mubr.bf16.mxu0 %v3095_v1 }
 0x464   :  { %1629 = vmatprep.subr.bf16.mxu0 %v3352_v54  ;;  %2739 = vmatprep.mubr.msk.bf16.mxu1 %vm3096_vm0, %v3094_v0 }
 0x465   :  { %2724 = vmatpush3.bf16.msra.mxu1 %v2887_v48  ;;  %v2899_v48 = vld [vmem:[#allocation6 + $0x68] ss:$12 sps:$4 sm:$0xff]  }
 0x466   :  { %2725 = vmatprep.subr.bf16.mxu1 %v3094_v0 }
 0x467   :  { %1630 = vmatpush1.bf16.msra.mxu0 %v3355_v55 }
 0x468   :  { %1631 = vmatprep.subr.bf16.mxu0 %v3359_v58 }
 0x469   :  { %2726 = vmatpush3.bf16.msra.mxu1 %v2888_v49  ;;  %v2900_v49 = vld [vmem:[#allocation6 + $0x80] ss:$12 sps:$4 sm:$0xff]  }
 0x46a   :  { %2727 = vmatprep.subr.bf16.mxu1 %v3094_v0 }
 0x46b   :  { %1632 = vmatpush1.bf16.msra.mxu0 %v3362_v59 }
 0x46c   :  { %1633 = vmatprep.subr.bf16.mxu0 %v3366_v61 }
 0x46d   :  { %2728 = vmatpush3.bf16.msra.mxu1 %v2889_v50  ;;  %v2902_v50 = vld [vmem:[#allocation6 + $0xb0] ss:$12 sps:$4 sm:$0xff]  }
 0x46e   :  { %2729 = vmatprep.subr.bf16.mxu1 %v3094_v0 }
 0x46f   :  { %1634 = vmatpush1.bf16.msra.mxu0 %v3369_v62 }
 0x470   :  { %1635 = vmatprep.subr.bf16.mxu0 %v3375_v12 }
 0x471   :  { %2730 = vmatpush3.bf16.msra.mxu1 %v2890_v51  ;;  %v1463_v51 = vld [vmem:[#allocation3 + $0x78] sm:$0xff] }
 0x472   :  { %2731 = vmatprep.subr.bf16.mxu1 %v3094_v0 }
 0x473   :  { %1636 = vmatpush1.bf16.msra.mxu0 %v3373_v9 }
 0x474   :  { %1637 = vmatprep.subr.bf16.mxu0 %v3378_v18 }
 0x475   :  { %2732 = vmatpush3.bf16.msra.mxu1 %v2891_v53 }
 0x476   :  { %2733 = vmatprep.subr.bf16.mxu1 %v3094_v0 }
 0x477   :  { %1638 = vmatpush1.bf16.msra.mxu0 %v3382_v20 }
 0x478   :  { %1639 = vmatprep.subr.bf16.mxu0 %v3386_v22 }
 0x479   :  { %2734 = vmatpush3.bf16.msra.mxu1 %v2892_v56 }
 0x47a   :  { %2735 = vmatprep.subr.bf16.mxu1 %v3094_v0 }
 0x47b   :  { %1640 = vmatpush1.bf16.msra.mxu0 %v3389_v23 }
 0x47c   :  { %1641 = vmatprep.subr.bf16.mxu0 %v3393_v4 }
 0x47d   :  { %2736 = vmatpush3.bf16.msra.mxu1 %v2893_v60 }
 0x47e   :  { %2737 = vmatprep.subr.bf16.mxu1 %v3094_v0 }
 0x47f   :  { %1642 = vmatpush1.bf16.msra.mxu0 %v3396_v5 }
 0x480   :  { %1907 = vmatprep.subr.bf16.mxu0 %v3346_v52 }
 0x481   :  { %2738 = vmatpush3.bf16.msra.mxu1 %v2894_v63  ;;  %v1464_v63 = vld [vmem:[#allocation3 + $0x80] sm:$0xff] }
 0x482   :  { %2743 = vmatprep.subr.bf16.mxu1 %v3094_v0 }
 0x535   :  { %v1381_v21 = vpop.f32.mrb[16].mxu0  ;;  %v1422_v3 = vpop.f32.mrb[16].mxu1 }
 0x536   :  { %v1428_v6 = vadd.f32 %v1381_v21, %v1183_v14  ;;  %v1383_v8 = vpop.f32.mrb[17].mxu0  ;;  %v2721_v10 = vpop.f32.mrb[17].mxu1  ;;  %v1442_v30 = vadd.f32 %v3262_v57, %v1422_v3 }
 0x537   :  { %v1385_v11 = vpop.f32.mrb[18].mxu0  ;;  %v1425_v13 = vpop.f32.mrb[18].mxu1  ;;  %v1435_v24 = vadd.f32 %v1383_v8, %v1184_v7 }
 0x538   :  { %v2465_v15 = vmul.f32 -1.442695, %v1428_v6  ;;  %v1386_v16 = vpop.f32.mrb[19].mxu0  ;;  %v2722_v17 = vpop.f32.mrb[19].mxu1 }
 0x539   :  { %v2466_v26 = vmul.f32 -1.442695, %v1435_v24 }
 0x53a   :  { %2951 = vpow2.f32 %v2465_v15 }
 0x53b   :  { %2953 = vpow2.f32 %v2466_v26 }
 0x544   :  { %v2952_v27 = vpop.eup %2951 }
 0x545   :  { %v1432_v25 = vadd.f32 1.0, %v2952_v27  ;;  %v2954_v28 = vpop.eup %2953 }
 0x546   :  { %v1439_v29 = vadd.f32 1.0, %v2954_v28 }
 0x547   :  { %2955 = vrcp.f32 %v1432_v25  ;;  %v1465_v25 = vld [vmem:[#allocation3 + $0x88] sm:$0xff] }
 0x548   :  { %2957 = vrcp.f32 %v1439_v29 }
 0x551   :  { %v2956_v31 = vpop.eup %2955 }
 0x552   :  { %v1443_v33 = vmul.f32 %v2956_v31, %v1442_v30  ;;  %v2958_v34 = vpop.eup %2957 }
 0x553   :  { %v1446_v35 = vsub.f32 1.0, %v2958_v34  ;;  %v1448_v37 = vmul.f32 %v2958_v34, %v3406_v46  ;;  %v1736_v34 = vpop.permute.xlu1 %1735 }
 0x554   :  { %v1444_v2 = vadd.f32 %v1443_v33, %v1185_v32  ;;  %vm1737_vm15 = vcmp.eq.s32.totalorder %v1736_v34, 1 }
 0x556   :  { %2959 = vtanh.f32 %v1444_v2 }
 0x560   :  { %v2960_v36 = vpop.eup %2959 }
 0x561   :  { %v1447_v38 = vmul.f32 %v2960_v36, %v1446_v35 }
 0x563   :  { %v1449_v40 = vadd.f32 %v1448_v37, %v1447_v38 }
 0x565   :  { %v1458_v41 = vsel %vm1457_vm14, %v1449_v40, 0.0  ;;  %v3440_v42 = vsel %vm1457_vm14, %v1449_v40, %v3406_v46  ;;  %v2897_v46 = vld [vmem:[#allocation6 + $0x38] ss:$12 sps:$4 sm:$0xff]  }
 0x566   :  { %1460 = vst [vmem:[#allocation8 + $0x20] sm:$0xff] %v1458_v41  ;;  %v1466_v43 = vpack.c.bf16 %v3440_v42, %v3440_v42 }
 0x568   :  { %1660 = vmatmul.mubr.bf16.vlgmr.msra.gmra.mrb[20].mxu0 %v1466_v43  ;;  %2740 = vmatmul.mubr.bf16.vlgmr.msra.gmra.mrb[20].mxu1 %v1466_v43 }
 0x569   :  { %1908 = vmatpush1.bf16.msra.mxu0 %v3348_v19  ;;  %1939 = vmatprep.mubr.bf16.mxu0 %v3095_v1 }
 0x56a   :  { %1909 = vmatprep.subr.bf16.mxu0 %v3352_v54  ;;  %2759 = vmatprep.mubr.msk.bf16.mxu1 %vm3096_vm0, %v3094_v0 }
 0x56b   :  { %2744 = vmatpush3.bf16.msra.mxu1 %v2895_v44 }
 0x56c   :  { %2745 = vmatprep.subr.bf16.mxu1 %v3094_v0 }
 0x56d   :  { %1910 = vmatpush1.bf16.msra.mxu0 %v3355_v55 }
 0x56e   :  { %1911 = vmatprep.subr.bf16.mxu0 %v3359_v58 }
 0x56f   :  { %2746 = vmatpush3.bf16.msra.mxu1 %v2896_v45 }
 0x570   :  { %2747 = vmatprep.subr.bf16.mxu1 %v3094_v0 }
 0x571   :  { %1912 = vmatpush1.bf16.msra.mxu0 %v3362_v59 }
 0x572   :  { %1913 = vmatprep.subr.bf16.mxu0 %v3366_v61 }
 0x573   :  { %2748 = vmatpush3.bf16.msra.mxu1 %v2897_v46 }
 0x574   :  { %2749 = vmatprep.subr.bf16.mxu1 %v3094_v0 }
 0x575   :  { %1914 = vmatpush1.bf16.msra.mxu0 %v3369_v62 }
 0x576   :  { %1915 = vmatprep.subr.bf16.mxu0 %v3375_v12 }
 0x577   :  { %2750 = vmatpush3.bf16.msra.mxu1 %v2898_v47  ;;  %v2991_v47 = vld [vmem:[%s3542_s3] ss:$0 sm:$0xff]  ;;  %s3098_s3 = smov [#allocation8]  }
 0x578   :  { %2751 = vmatprep.subr.bf16.mxu1 %v3094_v0  ;;  %s2309_s24 = sshll.u32 %s3098_s3, 4  ;;  %s2310_s24 = int_to_ptr.vmem [resolvable:$true] %s2309_s24 }
 0x579   :  { %1916 = vmatpush1.bf16.msra.mxu0 %v3373_v9  ;;  %s3036_s27 = scalar_lea.vmem %s2310_s24, 1024  ;;  %p3041_p3 = scmp.lt.s32.totalorder %s2310_s24, %s2310_s24 }
 0x57a   :  { %1917 = vmatprep.subr.bf16.mxu0 %v3378_v18  ;;  %p3037_p2 = scmp.ne.s32.totalorder %s2310_s24, %s3036_s27  ;;  %p3042_p4 = scmp.lt.s32.totalorder %s3036_s27, %s3036_s27 }
 0x57b   :  { %2752 = vmatpush3.bf16.msra.mxu1 %v2899_v48 }
 0x57c   :  { %2753 = vmatprep.subr.bf16.mxu1 %v3094_v0  ;;  %p3043_p5 = por %p3042_p4, %p3041_p3 }
 0x57d   :  { %1918 = vmatpush1.bf16.msra.mxu0 %v3382_v20 }
 0x57e   :  { %1919 = vmatprep.subr.bf16.mxu0 %v3386_v22  ;;  %p3044_p6 = pnand %p3043_p5, %p3037_p2 }
 0x57f   :  { %2754 = vmatpush3.bf16.msra.mxu1 %v2900_v49 }
 0x580   :  { %2755 = vmatprep.subr.bf16.mxu1 %v3094_v0 }
 0x581   :  { %1920 = vmatpush1.bf16.msra.mxu0 %v3389_v23 }
 0x582   :  { %1921 = vmatprep.subr.bf16.mxu0 %v3393_v4 }
 0x585   :  { %1922 = vmatpush1.bf16.msra.mxu0 %v3396_v5 }
 0x586   :  { %2187 = vmatprep.subr.bf16.mxu0 %v3346_v52  ;;  %v2901_v52 = vld [vmem:[#allocation6 + $0x98] ss:$12 sps:$4 sm:$0xff]  }
 0x587   :  { %2756 = vmatpush3.bf16.msra.mxu1 %v2901_v52  ;;  %v1745_v52 = vld [vmem:[#allocation3 + $0xa0] sm:$0xff] }
 0x588   :  { %2757 = vmatprep.subr.bf16.mxu1 %v3094_v0 }
 0x58b   :  { %2758 = vmatpush3.bf16.msra.mxu1 %v2902_v50 }
 0x58c   :  { %2763 = vmatprep.subr.bf16.mxu1 %v3094_v0 }
 0x63b   :  { %v1661_v53 = vpop.f32.mrb[20].mxu0  ;;  %v1702_v56 = vpop.f32.mrb[20].mxu1 }
 0x63c   :  { %v1708_v60 = vadd.f32 %v1661_v53, %v1463_v51  ;;  %v1663_v14 = vpop.f32.mrb[21].mxu0  ;;  %v2741_v21 = vpop.f32.mrb[21].mxu1  ;;  %v1722_v26 = vadd.f32 %v3262_v57, %v1702_v56 }
 0x63d   :  { %v1665_v3 = vpop.f32.mrb[22].mxu0  ;;  %v1705_v6 = vpop.f32.mrb[22].mxu1  ;;  %v1715_v11 = vadd.f32 %v1663_v14, %v1464_v63 }
 0x63e   :  { %v2491_v7 = vmul.f32 -1.442695, %v1708_v60  ;;  %v1666_v8 = vpop.f32.mrb[23].mxu0  ;;  %v2742_v10 = vpop.f32.mrb[23].mxu1 }
 0x63f   :  { %v2492_v13 = vmul.f32 -1.442695, %v1715_v11  ;;  %v2016_v63 = vpop.permute.xlu0 %2015  ;;  %v2023_v10 = vld [vmem:[#allocation3 + $0xa8] sm:$0xff] }
 0x640   :  { %2961 = vpow2.f32 %v2491_v7 }
 0x641   :  { %2963 = vpow2.f32 %v2492_v13 }
 0x64a   :  { %v2962_v15 = vpop.eup %2961 }
 0x64b   :  { %v1712_v16 = vadd.f32 1.0, %v2962_v15  ;;  %v2964_v17 = vpop.eup %2963 }
 0x64c   :  { %v1719_v24 = vadd.f32 1.0, %v2964_v17 }
 0x64d   :  { %2965 = vrcp.f32 %v1712_v16  ;;  %v2024_v16 = vld [vmem:[#allocation3 + $0xb0] sm:$0xff] }
 0x64e   :  { %2967 = vrcp.f32 %v1719_v24 }
 0x657   :  { %v2966_v27 = vpop.eup %2965 }
 0x658   :  { %v1723_v28 = vmul.f32 %v2966_v27, %v1722_v26  ;;  %v2968_v30 = vpop.eup %2967 }
 0x659   :  { %v1726_v31 = vsub.f32 1.0, %v2968_v30  ;;  %v1728_v33 = vmul.f32 %v2968_v30, %v3440_v42 }
 0x65a   :  { %v1724_v29 = vadd.f32 %v1723_v28, %v1465_v25 }
 0x65c   :  { %2969 = vtanh.f32 %v1724_v29 }
 0x666   :  { %v2970_v32 = vpop.eup %2969 }
 0x667   :  { %v1727_v2 = vmul.f32 %v2970_v32, %v1726_v31 }
 0x669   :  { %v1729_v35 = vadd.f32 %v1728_v33, %v1727_v2 }
 0x66b   :  { %v1738_v36 = vsel %vm1737_vm15, %v1729_v35, 0.0  ;;  %v3474_v37 = vsel %vm1737_vm15, %v1729_v35, %v3440_v42 }
 0x66c   :  { %1740 = vst [vmem:[#allocation8 + $0x28] sm:$0xff] %v1738_v36  ;;  %v1746_v57 = vpack.c.bf16 %v3474_v37, %v3474_v37 }
 0x66e   :  { %1940 = vmatmul.mubr.bf16.vlgmr.msra.gmra.mrb[24].mxu0 %v1746_v57  ;;  %2760 = vmatmul.mubr.bf16.vlgmr.msra.gmra.mrb[24].mxu1 %v1746_v57 }
 0x66f   :  { %2188 = vmatpush1.bf16.msra.mxu0 %v3348_v19  ;;  %2219 = vmatprep.mubr.bf16.mxu0 %v3095_v1  ;;  %v2903_v1 = vld [vmem:[#allocation6 + $0x8] ss:$12 sps:$4 sm:$0xff]   ;;  %v2904_v19 = vld [vmem:[#allocation6 + $0x20] ss:$12 sps:$4 sm:$0xff]  }
 0x670   :  { %2189 = vmatprep.subr.bf16.mxu0 %v3352_v54  ;;  %2779 = vmatprep.mubr.msk.bf16.mxu1 %vm3096_vm0, %v3094_v0  ;;  %v2905_v54 = vld [vmem:[#allocation6 + $0x38] ss:$12 sps:$4 sm:$0xff]   ;;  %vm2017_vm0 = vcmp.eq.s32.totalorder %v2016_v63, 1 }
 0x671   :  { %2764 = vmatpush3.bf16.msra.mxu1 %v2903_v1 }
 0x672   :  { %2765 = vmatprep.subr.bf16.mxu1 %v3094_v0 }
 0x673   :  { %2190 = vmatpush1.bf16.msra.mxu0 %v3355_v55  ;;  %v2906_v55 = vld [vmem:[#allocation6 + $0x50] ss:$12 sps:$4 sm:$0xff]  }
 0x674   :  { %2191 = vmatprep.subr.bf16.mxu0 %v3359_v58  ;;  %v2907_v58 = vld [vmem:[#allocation6 + $0x68] ss:$12 sps:$4 sm:$0xff]  }
 0x675   :  { %2766 = vmatpush3.bf16.msra.mxu1 %v2904_v19 }
 0x676   :  { %2767 = vmatprep.subr.bf16.mxu1 %v3094_v0 }
 0x677   :  { %2192 = vmatpush1.bf16.msra.mxu0 %v3362_v59  ;;  %v2908_v59 = vld [vmem:[#allocation6 + $0x80] ss:$12 sps:$4 sm:$0xff]  }
 0x678   :  { %2193 = vmatprep.subr.bf16.mxu0 %v3366_v61  ;;  %v2909_v61 = vld [vmem:[#allocation6 + $0x98] ss:$12 sps:$4 sm:$0xff]  }
 0x679   :  { %2768 = vmatpush3.bf16.msra.mxu1 %v2905_v54 }
 0x67a   :  { %2769 = vmatprep.subr.bf16.mxu1 %v3094_v0 }
 0x67b   :  { %2194 = vmatpush1.bf16.msra.mxu0 %v3369_v62  ;;  %v2910_v62 = vld [vmem:[#allocation6 + $0xb0] ss:$12 sps:$4 sm:$0xff]  }
 0x67c   :  { %2195 = vmatprep.subr.bf16.mxu0 %v3375_v12 }
 0x67d   :  { %2770 = vmatpush3.bf16.msra.mxu1 %v2906_v55 }
 0x67e   :  { %2771 = vmatprep.subr.bf16.mxu1 %v3094_v0 }
 0x67f   :  { %2196 = vmatpush1.bf16.msra.mxu0 %v3373_v9  ;;  %v1743_v9 = vld [vmem:[#allocation3 + $0x90] sm:$0xff] }
 0x680   :  { %2197 = vmatprep.subr.bf16.mxu0 %v3378_v18 }
 0x681   :  { %2772 = vmatpush3.bf16.msra.mxu1 %v2907_v58  ;;  %v2296_v58 = vpop.permute.xlu1 %2295 }
 0x682   :  { %2773 = vmatprep.subr.bf16.mxu1 %v3094_v0  ;;  %vm2297_vm1 = vcmp.eq.s32.totalorder %v2296_v58, 1 }
 0x683   :  { %2198 = vmatpush1.bf16.msra.mxu0 %v3382_v20 }
 0x684   :  { %2199 = vmatprep.subr.bf16.mxu0 %v3386_v22  ;;  %v1744_v22 = vld [vmem:[#allocation3 + $0x98] sm:$0xff] }
 0x685   :  { %2774 = vmatpush3.bf16.msra.mxu1 %v2908_v59 }
 0x686   :  { %2775 = vmatprep.subr.bf16.mxu1 %v3094_v0 }
 0x687   :  { %2200 = vmatpush1.bf16.msra.mxu0 %v3389_v23 }
 0x688   :  { %2201 = vmatprep.subr.bf16.mxu0 %v3393_v4 }
 0x689   :  { %2776 = vmatpush3.bf16.msra.mxu1 %v2909_v61 }
 0x68a   :  { %2777 = vmatprep.subr.bf16.mxu1 %v3094_v0 }
 0x68b   :  { %2202 = vmatpush1.bf16.msra.mxu0 %v3396_v5 }
 0x68d   :  { %2778 = vmatpush3.bf16.msra.mxu1 %v2910_v62 }
 0x741   :  { %v1941_v12 = vpop.f32.mrb[24].mxu0  ;;  %v1982_v18 = vpop.f32.mrb[24].mxu1 }
 0x742   :  { %v1988_v20 = vadd.f32 %v1941_v12, %v1743_v9  ;;  %v1943_v23 = vpop.f32.mrb[25].mxu0  ;;  %v2761_v4 = vpop.f32.mrb[25].mxu1  ;;  %v2002_v48 = vadd.f32 %v2991_v47, %v1982_v18 }
 0x743   :  { %v1945_v5 = vpop.f32.mrb[26].mxu0  ;;  %v1985_v38 = vpop.f32.mrb[26].mxu1  ;;  %v1995_v42 = vadd.f32 %v1943_v23, %v1744_v22 }
 0x744   :  { %v2517_v39 = vmul.f32 -1.442695, %v1988_v20  ;;  %v1946_v40 = vpop.f32.mrb[27].mxu0  ;;  %v2762_v41 = vpop.f32.mrb[27].mxu1 }
 0x745   :  { %v2518_v43 = vmul.f32 -1.442695, %v1995_v42 }
 0x746   :  { %2971 = vpow2.f32 %v2517_v39 }
 0x747   :  { %2973 = vpow2.f32 %v2518_v43 }
 0x750   :  { %v2972_v44 = vpop.eup %2971 }
 0x751   :  { %v1992_v45 = vadd.f32 1.0, %v2972_v44  ;;  %v2974_v0 = vpop.eup %2973 }
 0x752   :  { %v1999_v46 = vadd.f32 1.0, %v2974_v0 }
 0x753   :  { %2975 = vrcp.f32 %v1992_v45 }
 0x754   :  { %2977 = vrcp.f32 %v1999_v46 }
 0x75d   :  { %v2976_v49 = vpop.eup %2975 }
 0x75e   :  { %v2003_v50 = vmul.f32 %v2976_v49, %v2002_v48  ;;  %v2978_v53 = vpop.eup %2977 }
 0x75f   :  { %v2006_v56 = vsub.f32 1.0, %v2978_v53  ;;  %v2008_v14 = vmul.f32 %v2978_v53, %v3474_v37 }
 0x760   :  { %v2004_v51 = vadd.f32 %v2003_v50, %v1745_v52 }
 0x762   :  { %2979 = vtanh.f32 %v2004_v51 }
 0x76c   :  { %v2980_v60 = vpop.eup %2979 }
 0x76d   :  { %v2007_v21 = vmul.f32 %v2980_v60, %v2006_v56 }
 0x76f   :  { %v2009_v3 = vadd.f32 %v2008_v14, %v2007_v21 }
 0x771   :  { %v2018_v6 = vsel %vm2017_vm0, %v2009_v3, 0.0  ;;  %v2021_v7 = vsel %vm2017_vm0, %v2009_v3, %v3474_v37  ;;  %v2025_v37 = vld [vmem:[#allocation3 + $0xb8] sm:$0xff] }
 0x772   :  { %2020 = vst [vmem:[#allocation8 + $0x30] sm:$0xff] %v2018_v6  ;;  %v2026_v8 = vpack.c.bf16 %v2021_v7, %v2021_v7 }
 0x774   :  { %2220 = vmatmul.mubr.bf16.vlgmr.msra.gmra.mrb[28].mxu0 %v2026_v8  ;;  %2780 = vmatmul.mubr.bf16.vlgmr.msra.gmra.mrb[28].mxu1 %v2026_v8 }
 0x847   :  { %v2221_v11 = vpop.f32.mrb[28].mxu0  ;;  %v2262_v13 = vpop.f32.mrb[28].mxu1 }
 0x848   :  { %v2268_v15 = vadd.f32 %v2221_v11, %v2023_v10  ;;  %v2223_v17 = vpop.f32.mrb[29].mxu0  ;;  %v2781_v24 = vpop.f32.mrb[29].mxu1  ;;  %v2282_v35 = vadd.f32 %v2991_v47, %v2262_v13 }
 0x849   :  { %v2225_v26 = vpop.f32.mrb[30].mxu0  ;;  %v2265_v27 = vpop.f32.mrb[30].mxu1  ;;  %v2275_v30 = vadd.f32 %v2223_v17, %v2024_v16 }
 0x84a   :  { %v2543_v25 = vmul.f32 -1.442695, %v2268_v15  ;;  %v2226_v28 = vpop.f32.mrb[31].mxu0  ;;  %v2782_v29 = vpop.f32.mrb[31].mxu1 }
 0x84b   :  { %v2544_v31 = vmul.f32 -1.442695, %v2275_v30 }
 0x84c   :  { %2981 = vpow2.f32 %v2543_v25 }
 0x84d   :  { %2983 = vpow2.f32 %v2544_v31 }
 0x856   :  { %v2982_v32 = vpop.eup %2981 }
 0x857   :  { %v2272_v33 = vadd.f32 1.0, %v2982_v32  ;;  %v2984_v2 = vpop.eup %2983 }
 0x858   :  { %v2279_v34 = vadd.f32 1.0, %v2984_v2 }
 0x859   :  { %2985 = vrcp.f32 %v2272_v33 }
 0x85a   :  { %2987 = vrcp.f32 %v2279_v34 }
 0x863   :  { %v2986_v36 = vpop.eup %2985 }
 0x864   :  { %v2283_v57 = vmul.f32 %v2986_v36, %v2282_v35  ;;  %v2988_v19 = vpop.eup %2987 }
 0x865   :  { %v2286_v54 = vsub.f32 1.0, %v2988_v19  ;;  %v2288_v61 = vmul.f32 %v2988_v19, %v2021_v7 }
 0x866   :  { %v2284_v1 = vadd.f32 %v2283_v57, %v2025_v37 }
 0x868   :  { %2989 = vtanh.f32 %v2284_v1 }
 0x872   :  { %v2990_v55 = vpop.eup %2989 }
 0x873   :  { %v2287_v59 = vmul.f32 %v2990_v55, %v2286_v54 }
 0x875   :  { %v2289_v62 = vadd.f32 %v2288_v61, %v2287_v59 }
 0x877   :  { %v2298_v9 = vsel %vm2297_vm1, %v2289_v62, 0.0  ;;  %v2301_v12 = vsel %vm2297_vm1, %v2289_v62, %v2021_v7 }
 0x878   :  { %2300 = vst [vmem:[#allocation8 + $0x38] sm:$0xff] %v2298_v9  ;;  %2303 = vst [vmem:[#allocation9] sm:$0xff] %v2301_v12 }
 0x879   :  { %3047 = shalt.err (!%p3044_p6)
}
 0x87a   :  { %s3048_s30 = scalar_lea.hbm %s3543_s4, 1024 }
 0x87b   :  { %p3049_p7 = scmp.ne.s32.totalorder %s3543_s4, %s3048_s30  ;;  %p3052_p8 = scmp.lt.u32.totalorder %s3048_s30, %s3543_s4 }
 0x87d   :  { %p3054_p9 = pnand %p3052_p8, %p3049_p7 }
 0x87f   :  { %3057 = shalt.err (!%p3054_p9)
}
 0x880   :  { %s3100_s10 = smov 128   ;;  %s3101_s11 = smov 8  }
 0x881   :  { %2315 = dma.vmem_to_hbm [thread:$0]  %s2310_s24, 1024, %s3543_s4, [#allocation5], %s3100_s10, %s3100_s10, %s3101_s11  }
 0x882   :  { %s3058_s14 = scalar_lea.vmem %s3508_s26, 128  ;;  %p3063_p11 = scmp.lt.s32.totalorder %s3508_s26, %s3508_s26 }
 0x883   :  { %p3059_p10 = scmp.ne.s32.totalorder %s3508_s26, %s3058_s14  ;;  %p3064_p12 = scmp.lt.s32.totalorder %s3058_s14, %s3058_s14 }
 0x885   :  { %p3065_p13 = por %p3064_p12, %p3063_p11 }
 0x887   :  { %p3066_p0 = pnand %p3065_p13, %p3059_p10 }
 0x889   :  { %3069 = shalt.err (!%p3066_p0)
}
 0x88a   :  { %s3070_s1 = scalar_lea.hbm %s3544_s5, 128 }
 0x88b   :  { %p3071_p1 = scmp.ne.s32.totalorder %s3544_s5, %s3070_s1  ;;  %p3074_p2 = scmp.lt.u32.totalorder %s3070_s1, %s3544_s5 }
 0x88d   :  { %p3076_p3 = pnand %p3074_p2, %p3071_p1 }
 0x88f   :  { %3079 = shalt.err (!%p3076_p3)
}
 0x890   :  { %2325 = dma.vmem_to_hbm [thread:$0]  %s3508_s26, 128, %s3544_s5, [#allocation10]  }
 0x891   :  { %3084 = dma.done.wait [#allocation5], 1024  }
 0x892   :  { %3085 = vsyncadd [#allocation5], 4294966272 }
 0x893   :  { %3086 = dma.done.wait [#allocation10], 128  }
 0x894   :  { %3087 = vsyncadd [#allocation10], 4294967168 }
 0x895   :  { %2332 = vsyncpa [#allocation4], 1 }
 0x896   :  { %2333 = vsyncpa [#allocation7], 1 }
 0x897   :  { %2334 = vsyncpa [#allocation5], 1 }
 0x898   :  { %2335 = vsyncpa [#allocation10], 1 }

</bundles_post_ra>
